<compile_context>
chip_gen: v7x
topology: tpu7x:2x2x1
jax: 0.10.0
libtpu: 0.0.40
codegen_flags: <defaults>
</compile_context>

<pallas_src>
import functools

import jax
import jax.numpy as jnp
from jax import lax
from jax.experimental import pallas as pl
from jax.experimental.pallas import tpu as pltpu

GENERATORCONFIGS = {
    "mnist": (512, 28), "fmnist": (512, 28), "emnist": (512, 28),
    "rmnist": (512, 28), "cifar": (512, 32), "cinic10": (512, 32),
    "cifar100": (512, 32), "pacs": (512, 224),
}

_BN_EPS = 1e-5


# --------------------------------------------------------------------------- #
# Kernel body (shared by both eps-source variants)
# --------------------------------------------------------------------------- #
def _forward_body(lab_col, w1, gb, w2, b2, eps, out_ref):
    """gather -> BN(train) -> ReLU -> fused (mu|sigma) matmul -> softplus ->
    rsample -> lane-dense packed store."""
    bsz = lab_col.shape[0]
    ncls, hid = w1.shape
    zd = eps.shape[1]

    # --- fc layer: one_hot(labels) @ W1^T + b1 == row select of (W1^T + b1) ---
    # b1 is pre-folded into w1 rows (exact for hard labels).  n_class is small
    # and static, so an unrolled broadcast-select gather is cheaper than any
    # MXU pass and avoids dynamic-index loads.
    h = jnp.zeros((bsz, hid), jnp.float32)
    for c in range(ncls):
        h = jnp.where(lab_col == c, w1[c:c + 1, :], h)

    # --- BatchNorm1d (training): one-pass batch stats, folded affine, ReLU ---
    inv_b = 1.0 / bsz
    mean = jnp.sum(h, axis=0, keepdims=True) * inv_b
    ex2 = jnp.sum(h * h, axis=0, keepdims=True) * inv_b
    var = jnp.maximum(ex2 - mean * mean, 0.0)          # biased var, clamped >= 0
    scale = gb[0:1, :] * lax.rsqrt(var + _BN_EPS)      # gamma row
    shift = gb[1:2, :] - mean * scale                  # beta row
    h = jnp.maximum(h * scale + shift, 0.0)            # BN + affine + ReLU (1 FMA pass)

    # --- fused representation layer: one MXU matmul, f32 accumulation ---
    r = jnp.dot(h.astype(w2.dtype), w2,
                preferred_element_type=jnp.float32) + b2          # (B, 2*zd)

    mu = r[:, :zd]
    s_raw = r[:, zd:]
    # numerically stable softplus (exp/log only)
    sigma = jnp.maximum(s_raw, 0.0) + jnp.log(1.0 + jnp.exp(-jnp.abs(s_raw)))
    z = mu + sigma * eps                               # rsample, num_samples = 1

    # --- lane-dense packed output slab: [z | mu | sigma | eps | 0-pad] ---
    packed = jnp.concatenate([z, mu, sigma, eps], axis=-1)        # (B, 4*zd)
    pad = out_ref.shape[1] - packed.shape[1]
    if pad > 0:
        packed = jnp.concatenate(
            [packed, jnp.zeros((bsz, pad), jnp.float32)], axis=-1)
    out_ref[...] = packed


def _kernel_inkernel_rng(seed_ref, labels_ref, w1_ref, gb_ref, w2_ref, b2_ref,
                         out_ref):
    """eps drawn on-chip with the TPU PRNG (no separate RNG launch / eps DMA)."""
    pltpu.prng_seed(seed_ref[0])
    bsz = labels_ref.shape[0]
    zd = b2_ref.shape[1] // 2
    eps = pltpu.stateful_normal((bsz, zd), jnp.float32)
    _forward_body(labels_ref[...], w1_ref[...], gb_ref[...], w2_ref[...],
                  b2_ref[...], eps, out_ref)


def _kernel_host_eps(labels_ref, w1_ref, gb_ref, w2_ref, b2_ref, eps_ref,
                     out_ref):
    """Fallback: eps generated in the wrapper with jax.random and passed in."""
    _forward_body(labels_ref[...], w1_ref[...], gb_ref[...], w2_ref[...],
                  b2_ref[...], eps_ref[...], out_ref)


# --------------------------------------------------------------------------- #
# Parameter plumbing (one-time) and forward wrapper
# --------------------------------------------------------------------------- #
def prepare_params(params, *, w2_dtype=jnp.bfloat16):
    """One-time plumbing (NOT per-call):
      * b1 folded into rows of W1^T (exact for hard one-hot labels),
      * gamma/beta stacked into one (2, H) input,
      * mu/sigma weights fused into one (H, 2*z_dim) matrix, optionally bf16
        (halves the dominant weight DMA; matmul still accumulates in f32)."""
    w1, b1, gamma, beta, w2, b2 = params
    latent = w2.shape[0]
    w1_fold = (jnp.asarray(w1, jnp.float32).T
               + jnp.asarray(b1, jnp.float32)[None, :])           # (n_class, H)
    gb = jnp.stack([jnp.asarray(gamma, jnp.float32),
                    jnp.asarray(beta, jnp.float32)], axis=0)      # (2, H)
    return {
        "w1": w1_fold,
        "gb": gb,
        "w2": jnp.asarray(w2, jnp.float32).T.astype(w2_dtype),    # (H, 2*z_dim)
        "b2": jnp.asarray(b2, jnp.float32).reshape(1, latent),    # (1, 2*z_dim)
    }


def prob_generator_forward(labels, prepped, rng, *, z_dim,
                           use_inkernel_rng=True, return_noise=False):
    """ProbGenerator forward.  Returns (z, (z_mu, z_sigma))[, eps].

    `rng` is an int32 seed when use_inkernel_rng=True, else a jax PRNG key."""
    if labels.ndim != 1:
        # TODO(synk): soft/float label-matrix input path not ported to the fused kernel.
        raise NotImplementedError("Pallas ProbGenerator expects integer class labels.")

    batch = labels.shape[0]
    hidden = prepped["w1"].shape[1]
    lab_col = labels.astype(jnp.int32).reshape(batch, 1)
    packed_width = ((4 * z_dim + 127) // 128) * 128   # [z|mu|sigma|eps|pad]

    vmem = pl.BlockSpec(memory_space=pltpu.MemorySpace.VMEM)
    smem = pl.BlockSpec(memory_space=pltpu.MemorySpace.SMEM)
    out_shape = jax.ShapeDtypeStruct((batch, packed_width), jnp.float32)

    if use_inkernel_rng:
        seed = jnp.asarray(rng, jnp.int32).reshape(1)
        args = (seed, lab_col, prepped["w1"], prepped["gb"],
                prepped["w2"], prepped["b2"])
        kernel = _kernel_inkernel_rng
        in_specs = [smem, vmem, vmem, vmem, vmem, vmem]
    else:
        eps = jax.random.normal(rng, (batch, z_dim), dtype=jnp.float32)
        args = (lab_col, prepped["w1"], prepped["gb"],
                prepped["w2"], prepped["b2"], eps)
        kernel = _kernel_host_eps
        in_specs = [vmem] * 6

    cost = pl.CostEstimate(
        flops=2 * batch * hidden * 2 * z_dim + 12 * batch * hidden,
        transcendentals=4 * batch * z_dim + hidden,
        bytes_accessed=int(sum(a.size * a.dtype.itemsize for a in args)
                           + batch * packed_width * 4),
    )

    packed = pl.pallas_call(
        kernel,
        out_shape=out_shape,
        in_specs=in_specs,
        out_specs=pl.BlockSpec(memory_space=pltpu.MemorySpace.VMEM),
        cost_estimate=cost,
    )(*args)

    z = packed[:, :z_dim]
    z_mu = packed[:, z_dim:2 * z_dim]
    z_sigma = packed[:, 2 * z_dim:3 * z_dim]
    if return_noise:
        return z, (z_mu, z_sigma), packed[:, 3 * z_dim:4 * z_dim]
    return z, (z_mu, z_sigma)


# --------------------------------------------------------------------------- #
# Init + pure-JAX reference
# --------------------------------------------------------------------------- #
def init_params(key, n_class, hidden, z_dim):
    """Deterministic parameter init (shapes match the PyTorch module)."""
    k1, k2, k3, k4 = jax.random.split(key, 4)
    latent = 2 * z_dim
    lim1 = 1.0 / jnp.sqrt(jnp.float32(n_class))
    w1 = jax.random.uniform(k1, (hidden, n_class), jnp.float32, -lim1, lim1)
    b1 = jax.random.uniform(k2, (hidden,), jnp.float32, -lim1, lim1)
    gamma = jnp.ones((hidden,), jnp.float32)   # BatchNorm1d weight
    beta = jnp.zeros((hidden,), jnp.float32)   # BatchNorm1d bias
    lim2 = 1.0 / jnp.sqrt(jnp.float32(hidden))
    w2 = jax.random.uniform(k3, (latent, hidden), jnp.float32, -lim2, lim2)
    b2 = jax.random.uniform(k4, (latent,), jnp.float32, -lim2, lim2)
    return (w1, b1, gamma, beta, w2, b2)


def _reference_forward(labels, params, n_class, z_dim, eps):
    """Pure-JAX f32 reference (takes eps explicitly so it can consume the
    kernel-generated noise)."""
    w1, b1, gamma, beta, w2, b2 = params
    y = jax.nn.one_hot(labels, n_class, dtype=jnp.float32)
    h = jnp.dot(y, w1.T, precision=lax.Precision.HIGHEST) + b1
    mean = jnp.mean(h, axis=0, keepdims=True)
    var = jnp.mean((h - mean) ** 2, axis=0, keepdims=True)
    h = (h - mean) / jnp.sqrt(var + _BN_EPS) * gamma + beta
    h = jnp.maximum(h, 0.0)
    r = jnp.dot(h, w2.T, precision=lax.Precision.HIGHEST) + b2
    mu = r[:, :z_dim]
    sigma = jax.nn.softplus(r[:, z_dim:])
    return mu + sigma * eps, mu, sigma


# --------------------------------------------------------------------------- #
# Demo / self-check
# --------------------------------------------------------------------------- #
if __name__ == "__main__":
    dataset = "cifar"
    hidden, _input_channel = GENERATORCONFIGS[dataset]
    n_class, z_dim, batch = 10, 32, 8

    key = jax.random.PRNGKey(0)
    pkey, lkey, nkey = jax.random.split(key, 3)

    params = init_params(pkey, n_class, hidden, z_dim)
    labels = jax.random.randint(lkey, (batch,), 0, n_class, dtype=jnp.int32)

    prepped_f32 = prepare_params(params, w2_dtype=jnp.float32)    # exactness check
    prepped_bf16 = prepare_params(params, w2_dtype=jnp.bfloat16)  # production config

    fwd_rng = jax.jit(functools.partial(
        prob_generator_forward, z_dim=z_dim,
        use_inkernel_rng=True, return_noise=True))
    fwd_eps = jax.jit(functools.partial(
        prob_generator_forward, z_dim=z_dim,
        use_inkernel_rng=False, return_noise=True))

    seed = jnp.asarray(1234, jnp.int32)

    # Preferred path: noise drawn on-chip.  Fall back to host eps if the TPU
    # PRNG path is unavailable on this jax/libtpu combination.
    use_rng = True
    try:
        z, (mu, sig), eps = fwd_rng(labels, prepped_f32, seed)
        jax.block_until_ready((z, mu, sig, eps))
        assert bool(jnp.all(jnp.isfinite(eps)))
        assert 0.3 < float(jnp.std(eps)) < 3.0
        assert float(jnp.abs(jnp.mean(eps))) < 0.5
    except Exception:
        use_rng = False

    if use_rng:
        z_ref, mu_ref, sig_ref = _reference_forward(labels, params, n_class,
                                                    z_dim, eps)
    else:
        eps_host = jax.random.normal(nkey, (batch, z_dim), dtype=jnp.float32)
        z, (mu, sig), eps = fwd_eps(labels, prepped_f32, nkey)
        jax.block_until_ready((z, mu, sig, eps))
        assert jnp.allclose(eps, eps_host)
        z_ref, mu_ref, sig_ref = _reference_forward(labels, params, n_class,
                                                    z_dim, eps_host)

    # f32-weight path: tight check against the pure-JAX reference.
    assert jnp.allclose(mu, mu_ref, atol=1e-3, rtol=1e-3)
    assert jnp.allclose(sig, sig_ref, atol=1e-3, rtol=1e-3)
    assert jnp.allclose(z, z_ref, atol=1e-3, rtol=1e-3)

    # bf16-weight production path: halves the dominant w2 DMA; looser tolerance.
    if use_rng:
        zb, (mub, sigb), epsb = fwd_rng(labels, prepped_bf16, seed)
    else:
        zb, (mub, sigb), epsb = fwd_eps(labels, prepped_bf16, nkey)
    jax.block_until_ready((zb, mub, sigb, epsb))
    zb_ref, mub_ref, sigb_ref = _reference_forward(labels, params, n_class,
                                                   z_dim, epsb)
    assert jnp.allclose(mub, mub_ref, atol=2e-2, rtol=2e-2)
    assert jnp.allclose(sigb, sigb_ref, atol=2e-2, rtol=2e-2)
    assert jnp.allclose(zb, zb_ref, atol=5e-2, rtol=5e-2)

    print("KERNEL_OK")
</pallas_src>

<mosaic_0001>
module attributes {stable_mosaic.version = 11 : i64} {
  func.func @_kernel_inkernel_rng(%arg0: memref<1xi32, #tpu.memory_space<smem>>, %arg1: memref<8x1xi32, #tpu.memory_space<vmem>>, %arg2: memref<10x512xf32, #tpu.memory_space<vmem>>, %arg3: memref<2x512xf32, #tpu.memory_space<vmem>>, %arg4: memref<512x64xf32, #tpu.memory_space<vmem>>, %arg5: memref<1x64xf32, #tpu.memory_space<vmem>>, %arg6: memref<8x128xf32, #tpu.memory_space<vmem>>) attributes {dimension_semantics = [], scalar_prefetch = 0 : i64, scratch_operands = 0 : i64, tpu.core_type = #tpu.core_type<tc>} {
    %c0 = arith.constant 0 : index
    %0 = memref.load %arg0[%c0] : memref<1xi32, #tpu.memory_space<smem>>
    "tpu.prng_set_seed_32"(%0) : (i32) -> ()
    %c0_i32 = arith.constant 0 : i32
    %c0_i32_0 = arith.constant 0 : i32
    %cst = arith.constant -0.99999994 : f32
    %cst_1 = arith.constant 1.000000e+00 : f32
    %1 = vector.broadcast %cst : f32 to vector<1x1xf32>
    %2 = vector.broadcast %cst_1 : f32 to vector<1x1xf32>
    %3 = "tpu.prng_random_bits"() : () -> vector<8x32xi32>
    %c9_i32 = arith.constant 9 : i32
    %4 = vector.broadcast %c9_i32 : i32 to vector<8x32xi32>
    %5 = arith.shrui %3, %4 : vector<8x32xi32>
    %c1065353216_i32 = arith.constant 1065353216 : i32
    %6 = vector.broadcast %c1065353216_i32 : i32 to vector<8x32xi32>
    %7 = arith.ori %5, %6 : vector<8x32xi32>
    %8 = tpu.bitcast %7 : vector<8x32xi32> -> vector<8x32xf32>
    %cst_2 = arith.constant 1.000000e+00 : f32
    %9 = vector.broadcast %cst_2 : f32 to vector<8x32xf32>
    %10 = arith.subf %8, %9 : vector<8x32xf32>
    %11 = arith.subf %2, %1 : vector<1x1xf32>
    %12 = vector.broadcast %11 : vector<1x1xf32> to vector<8x32xf32>
    %13 = arith.mulf %10, %12 : vector<8x32xf32>
    %14 = vector.broadcast %1 : vector<1x1xf32> to vector<8x32xf32>
    %15 = arith.addf %13, %14 : vector<8x32xf32>
    %16 = vector.broadcast %1 : vector<1x1xf32> to vector<8x32xf32>
    %17 = arith.maximumf %16, %15 : vector<8x32xf32>
    %cst_3 = arith.constant 0.000000e+00 : f32
    %18 = vector.broadcast %cst_3 : f32 to vector<8x32xf32>
    %19 = arith.subf %18, %17 : vector<8x32xf32>
    %20 = arith.mulf %17, %19 : vector<8x32xf32>
    %21 = math.log1p %20 : vector<8x32xf32>
    %cst_4 = arith.constant 0.000000e+00 : f32
    %22 = vector.broadcast %cst_4 : f32 to vector<8x32xf32>
    %23 = arith.subf %22, %21 : vector<8x32xf32>
    %cst_5 = arith.constant 5.000000e+00 : f32
    %24 = vector.broadcast %cst_5 : f32 to vector<8x32xf32>
    %25 = arith.cmpf olt, %23, %24 : vector<8x32xf32>
    %cst_6 = arith.constant 2.500000e+00 : f32
    %26 = vector.broadcast %cst_6 : f32 to vector<8x32xf32>
    %27 = arith.subf %23, %26 : vector<8x32xf32>
    %28 = math.sqrt %23 : vector<8x32xf32>
    %cst_7 = arith.constant 3.000000e+00 : f32
    %29 = vector.broadcast %cst_7 : f32 to vector<8x32xf32>
    %30 = arith.subf %28, %29 : vector<8x32xf32>
    %31 = arith.select %25, %27, %30 : vector<8x32xi1>, vector<8x32xf32>
    %cst_8 = arith.constant 2.81022636E-8 : f32
    %cst_9 = arith.constant -2.00214257E-4 : f32
    %32 = vector.broadcast %cst_8 : f32 to vector<8x32xf32>
    %33 = vector.broadcast %cst_9 : f32 to vector<8x32xf32>
    %34 = arith.select %25, %32, %33 : vector<8x32xi1>, vector<8x32xf32>
    %cst_10 = arith.constant 3.43273939E-7 : f32
    %cst_11 = arith.constant 1.00950558E-4 : f32
    %35 = vector.broadcast %cst_10 : f32 to vector<8x32xf32>
    %36 = vector.broadcast %cst_11 : f32 to vector<8x32xf32>
    %37 = arith.select %25, %35, %36 : vector<8x32xi1>, vector<8x32xf32>
    %38 = arith.mulf %34, %31 : vector<8x32xf32>
    %39 = arith.addf %37, %38 : vector<8x32xf32>
    %cst_12 = arith.constant -3.5233877E-6 : f32
    %cst_13 = arith.constant 0.00134934322 : f32
    %40 = vector.broadcast %cst_12 : f32 to vector<8x32xf32>
    %41 = vector.broadcast %cst_13 : f32 to vector<8x32xf32>
    %42 = arith.select %25, %40, %41 : vector<8x32xi1>, vector<8x32xf32>
    %43 = arith.mulf %39, %31 : vector<8x32xf32>
    %44 = arith.addf %42, %43 : vector<8x32xf32>
    %cst_14 = arith.constant -4.39150654E-6 : f32
    %cst_15 = arith.constant -0.00367342844 : f32
    %45 = vector.broadcast %cst_14 : f32 to vector<8x32xf32>
    %46 = vector.broadcast %cst_15 : f32 to vector<8x32xf32>
    %47 = arith.select %25, %45, %46 : vector<8x32xi1>, vector<8x32xf32>
    %48 = arith.mulf %44, %31 : vector<8x32xf32>
    %49 = arith.addf %47, %48 : vector<8x32xf32>
    %cst_16 = arith.constant 2.1858087E-4 : f32
    %cst_17 = arith.constant 0.00573950773 : f32
    %50 = vector.broadcast %cst_16 : f32 to vector<8x32xf32>
    %51 = vector.broadcast %cst_17 : f32 to vector<8x32xf32>
    %52 = arith.select %25, %50, %51 : vector<8x32xi1>, vector<8x32xf32>
    %53 = arith.mulf %49, %31 : vector<8x32xf32>
    %54 = arith.addf %52, %53 : vector<8x32xf32>
    %cst_18 = arith.constant -0.00125372503 : f32
    %cst_19 = arith.constant -0.0076224613 : f32
    %55 = vector.broadcast %cst_18 : f32 to vector<8x32xf32>
    %56 = vector.broadcast %cst_19 : f32 to vector<8x32xf32>
    %57 = arith.select %25, %55, %56 : vector<8x32xi1>, vector<8x32xf32>
    %58 = arith.mulf %54, %31 : vector<8x32xf32>
    %59 = arith.addf %57, %58 : vector<8x32xf32>
    %cst_20 = arith.constant -0.00417768164 : f32
    %cst_21 = arith.constant 0.00943887047 : f32
    %60 = vector.broadcast %cst_20 : f32 to vector<8x32xf32>
    %61 = vector.broadcast %cst_21 : f32 to vector<8x32xf32>
    %62 = arith.select %25, %60, %61 : vector<8x32xi1>, vector<8x32xf32>
    %63 = arith.mulf %59, %31 : vector<8x32xf32>
    %64 = arith.addf %62, %63 : vector<8x32xf32>
    %cst_22 = arith.constant 0.246640727 : f32
    %cst_23 = arith.constant 1.00167406 : f32
    %65 = vector.broadcast %cst_22 : f32 to vector<8x32xf32>
    %66 = vector.broadcast %cst_23 : f32 to vector<8x32xf32>
    %67 = arith.select %25, %65, %66 : vector<8x32xi1>, vector<8x32xf32>
    %68 = arith.mulf %64, %31 : vector<8x32xf32>
    %69 = arith.addf %67, %68 : vector<8x32xf32>
    %cst_24 = arith.constant 1.50140941 : f32
    %cst_25 = arith.constant 2.83297682 : f32
    %70 = vector.broadcast %cst_24 : f32 to vector<8x32xf32>
    %71 = vector.broadcast %cst_25 : f32 to vector<8x32xf32>
    %72 = arith.select %25, %70, %71 : vector<8x32xi1>, vector<8x32xf32>
    %73 = arith.mulf %69, %31 : vector<8x32xf32>
    %74 = arith.addf %72, %73 : vector<8x32xf32>
    %75 = math.absf %17 : vector<8x32xf32>
    %cst_26 = arith.constant 1.000000e+00 : f32
    %76 = vector.broadcast %cst_26 : f32 to vector<8x32xf32>
    %77 = arith.cmpf oeq, %75, %76 : vector<8x32xf32>
    %cst_27 = arith.constant 0x7F800000 : f32
    %78 = vector.broadcast %cst_27 : f32 to vector<8x32xf32>
    %79 = arith.mulf %78, %17 : vector<8x32xf32>
    %80 = arith.mulf %74, %17 : vector<8x32xf32>
    %81 = arith.select %77, %79, %80 : vector<8x32xi1>, vector<8x32xf32>
    %cst_28 = arith.constant 1.41421354 : f32
    %82 = vector.broadcast %cst_28 : f32 to vector<8x32xf32>
    %83 = arith.mulf %82, %81 : vector<8x32xf32>
    %c0_29 = arith.constant 0 : index
    %c0_30 = arith.constant 0 : index
    %84 = vector.load %arg1[%c0_29, %c0_30] : memref<8x1xi32, #tpu.memory_space<vmem>>, vector<8x1xi32>
    %c0_31 = arith.constant 0 : index
    %c0_32 = arith.constant 0 : index
    %85 = vector.load %arg2[%c0_31, %c0_32] : memref<10x512xf32, #tpu.memory_space<vmem>>, vector<10x512xf32>
    %c0_33 = arith.constant 0 : index
    %c0_34 = arith.constant 0 : index
    %86 = vector.load %arg3[%c0_33, %c0_34] : memref<2x512xf32, #tpu.memory_space<vmem>>, vector<2x512xf32>
    %c0_35 = arith.constant 0 : index
    %c0_36 = arith.constant 0 : index
    %87 = vector.load %arg4[%c0_35, %c0_36] : memref<512x64xf32, #tpu.memory_space<vmem>>, vector<512x64xf32>
    %c0_37 = arith.constant 0 : index
    %c0_38 = arith.constant 0 : index
    %88 = vector.load %arg5[%c0_37, %c0_38] : memref<1x64xf32, #tpu.memory_space<vmem>>, vector<1x64xf32>
    %cst_39 = arith.constant 0.000000e+00 : f32
    %89 = vector.broadcast %cst_39 : f32 to vector<8x512xf32>
    %c0_i32_40 = arith.constant 0 : i32
    %90 = vector.broadcast %c0_i32_40 : i32 to vector<8x1xi32>
    %91 = arith.cmpi eq, %84, %90 : vector<8x1xi32>
    %92 = vector.extract_strided_slice %85 {offsets = [0, 0], sizes = [1, 512], strides = [1, 1]} : vector<10x512xf32> to vector<1x512xf32>
    %93 = vector.shape_cast %91 : vector<8x1xi1> to vector<8x1xi1>
    %94 = vector.broadcast %93 : vector<8x1xi1> to vector<8x512xi1>
    %95 = vector.shape_cast %92 : vector<1x512xf32> to vector<1x512xf32>
    %96 = vector.broadcast %95 : vector<1x512xf32> to vector<8x512xf32>
    %97 = arith.select %94, %96, %89 : vector<8x512xi1>, vector<8x512xf32>
    %c1_i32 = arith.constant 1 : i32
    %98 = vector.broadcast %c1_i32 : i32 to vector<8x1xi32>
    %99 = arith.cmpi eq, %84, %98 : vector<8x1xi32>
    %100 = vector.extract_strided_slice %85 {offsets = [1, 0], sizes = [1, 512], strides = [1, 1]} : vector<10x512xf32> to vector<1x512xf32>
    %101 = vector.shape_cast %99 : vector<8x1xi1> to vector<8x1xi1>
    %102 = vector.broadcast %101 : vector<8x1xi1> to vector<8x512xi1>
    %103 = vector.shape_cast %100 : vector<1x512xf32> to vector<1x512xf32>
    %104 = vector.broadcast %103 : vector<1x512xf32> to vector<8x512xf32>
    %105 = arith.select %102, %104, %97 : vector<8x512xi1>, vector<8x512xf32>
    %c2_i32 = arith.constant 2 : i32
    %106 = vector.broadcast %c2_i32 : i32 to vector<8x1xi32>
    %107 = arith.cmpi eq, %84, %106 : vector<8x1xi32>
    %108 = vector.extract_strided_slice %85 {offsets = [2, 0], sizes = [1, 512], strides = [1, 1]} : vector<10x512xf32> to vector<1x512xf32>
    %109 = vector.shape_cast %107 : vector<8x1xi1> to vector<8x1xi1>
    %110 = vector.broadcast %109 : vector<8x1xi1> to vector<8x512xi1>
    %111 = vector.shape_cast %108 : vector<1x512xf32> to vector<1x512xf32>
    %112 = vector.broadcast %111 : vector<1x512xf32> to vector<8x512xf32>
    %113 = arith.select %110, %112, %105 : vector<8x512xi1>, vector<8x512xf32>
    %c3_i32 = arith.constant 3 : i32
    %114 = vector.broadcast %c3_i32 : i32 to vector<8x1xi32>
    %115 = arith.cmpi eq, %84, %114 : vector<8x1xi32>
    %116 = vector.extract_strided_slice %85 {offsets = [3, 0], sizes = [1, 512], strides = [1, 1]} : vector<10x512xf32> to vector<1x512xf32>
    %117 = vector.shape_cast %115 : vector<8x1xi1> to vector<8x1xi1>
    %118 = vector.broadcast %117 : vector<8x1xi1> to vector<8x512xi1>
    %119 = vector.shape_cast %116 : vector<1x512xf32> to vector<1x512xf32>
    %120 = vector.broadcast %119 : vector<1x512xf32> to vector<8x512xf32>
    %121 = arith.select %118, %120, %113 : vector<8x512xi1>, vector<8x512xf32>
    %c4_i32 = arith.constant 4 : i32
    %122 = vector.broadcast %c4_i32 : i32 to vector<8x1xi32>
    %123 = arith.cmpi eq, %84, %122 : vector<8x1xi32>
    %124 = vector.extract_strided_slice %85 {offsets = [4, 0], sizes = [1, 512], strides = [1, 1]} : vector<10x512xf32> to vector<1x512xf32>
    %125 = vector.shape_cast %123 : vector<8x1xi1> to vector<8x1xi1>
    %126 = vector.broadcast %125 : vector<8x1xi1> to vector<8x512xi1>
    %127 = vector.shape_cast %124 : vector<1x512xf32> to vector<1x512xf32>
    %128 = vector.broadcast %127 : vector<1x512xf32> to vector<8x512xf32>
    %129 = arith.select %126, %128, %121 : vector<8x512xi1>, vector<8x512xf32>
    %c5_i32 = arith.constant 5 : i32
    %130 = vector.broadcast %c5_i32 : i32 to vector<8x1xi32>
    %131 = arith.cmpi eq, %84, %130 : vector<8x1xi32>
    %132 = vector.extract_strided_slice %85 {offsets = [5, 0], sizes = [1, 512], strides = [1, 1]} : vector<10x512xf32> to vector<1x512xf32>
    %133 = vector.shape_cast %131 : vector<8x1xi1> to vector<8x1xi1>
    %134 = vector.broadcast %133 : vector<8x1xi1> to vector<8x512xi1>
    %135 = vector.shape_cast %132 : vector<1x512xf32> to vector<1x512xf32>
    %136 = vector.broadcast %135 : vector<1x512xf32> to vector<8x512xf32>
    %137 = arith.select %134, %136, %129 : vector<8x512xi1>, vector<8x512xf32>
    %c6_i32 = arith.constant 6 : i32
    %138 = vector.broadcast %c6_i32 : i32 to vector<8x1xi32>
    %139 = arith.cmpi eq, %84, %138 : vector<8x1xi32>
    %140 = vector.extract_strided_slice %85 {offsets = [6, 0], sizes = [1, 512], strides = [1, 1]} : vector<10x512xf32> to vector<1x512xf32>
    %141 = vector.shape_cast %139 : vector<8x1xi1> to vector<8x1xi1>
    %142 = vector.broadcast %141 : vector<8x1xi1> to vector<8x512xi1>
    %143 = vector.shape_cast %140 : vector<1x512xf32> to vector<1x512xf32>
    %144 = vector.broadcast %143 : vector<1x512xf32> to vector<8x512xf32>
    %145 = arith.select %142, %144, %137 : vector<8x512xi1>, vector<8x512xf32>
    %c7_i32 = arith.constant 7 : i32
    %146 = vector.broadcast %c7_i32 : i32 to vector<8x1xi32>
    %147 = arith.cmpi eq, %84, %146 : vector<8x1xi32>
    %148 = vector.extract_strided_slice %85 {offsets = [7, 0], sizes = [1, 512], strides = [1, 1]} : vector<10x512xf32> to vector<1x512xf32>
    %149 = vector.shape_cast %147 : vector<8x1xi1> to vector<8x1xi1>
    %150 = vector.broadcast %149 : vector<8x1xi1> to vector<8x512xi1>
    %151 = vector.shape_cast %148 : vector<1x512xf32> to vector<1x512xf32>
    %152 = vector.broadcast %151 : vector<1x512xf32> to vector<8x512xf32>
    %153 = arith.select %150, %152, %145 : vector<8x512xi1>, vector<8x512xf32>
    %c8_i32 = arith.constant 8 : i32
    %154 = vector.broadcast %c8_i32 : i32 to vector<8x1xi32>
    %155 = arith.cmpi eq, %84, %154 : vector<8x1xi32>
    %156 = vector.extract_strided_slice %85 {offsets = [8, 0], sizes = [1, 512], strides = [1, 1]} : vector<10x512xf32> to vector<1x512xf32>
    %157 = vector.shape_cast %155 : vector<8x1xi1> to vector<8x1xi1>
    %158 = vector.broadcast %157 : vector<8x1xi1> to vector<8x512xi1>
    %159 = vector.shape_cast %156 : vector<1x512xf32> to vector<1x512xf32>
    %160 = vector.broadcast %159 : vector<1x512xf32> to vector<8x512xf32>
    %161 = arith.select %158, %160, %153 : vector<8x512xi1>, vector<8x512xf32>
    %c9_i32_41 = arith.constant 9 : i32
    %162 = vector.broadcast %c9_i32_41 : i32 to vector<8x1xi32>
    %163 = arith.cmpi eq, %84, %162 : vector<8x1xi32>
    %164 = vector.extract_strided_slice %85 {offsets = [9, 0], sizes = [1, 512], strides = [1, 1]} : vector<10x512xf32> to vector<1x512xf32>
    %165 = vector.shape_cast %163 : vector<8x1xi1> to vector<8x1xi1>
    %166 = vector.broadcast %165 : vector<8x1xi1> to vector<8x512xi1>
    %167 = vector.shape_cast %164 : vector<1x512xf32> to vector<1x512xf32>
    %168 = vector.broadcast %167 : vector<1x512xf32> to vector<8x512xf32>
    %169 = arith.select %166, %168, %161 : vector<8x512xi1>, vector<8x512xf32>
    %cst_42 = arith.constant dense<0.000000e+00> : vector<512xf32>
    %170 = vector.multi_reduction <add>, %169, %cst_42 [0] : vector<8x512xf32> to vector<512xf32>
    %171 = vector.shape_cast %170 : vector<512xf32> to vector<1x512xf32>
    %cst_43 = arith.constant 1.250000e-01 : f32
    %172 = vector.broadcast %cst_43 : f32 to vector<1x512xf32>
    %173 = arith.mulf %171, %172 : vector<1x512xf32>
    %174 = arith.mulf %169, %169 : vector<8x512xf32>
    %cst_44 = arith.constant dense<0.000000e+00> : vector<512xf32>
    %175 = vector.multi_reduction <add>, %174, %cst_44 [0] : vector<8x512xf32> to vector<512xf32>
    %176 = vector.shape_cast %175 : vector<512xf32> to vector<1x512xf32>
    %cst_45 = arith.constant 1.250000e-01 : f32
    %177 = vector.broadcast %cst_45 : f32 to vector<1x512xf32>
    %178 = arith.mulf %176, %177 : vector<1x512xf32>
    %179 = arith.mulf %173, %173 : vector<1x512xf32>
    %180 = arith.subf %178, %179 : vector<1x512xf32>
    %cst_46 = arith.constant 0.000000e+00 : f32
    %181 = vector.broadcast %cst_46 : f32 to vector<1x512xf32>
    %182 = arith.maximumf %180, %181 : vector<1x512xf32>
    %183 = vector.extract_strided_slice %86 {offsets = [0, 0], sizes = [1, 512], strides = [1, 1]} : vector<2x512xf32> to vector<1x512xf32>
    %cst_47 = arith.constant 9.99999974E-6 : f32
    %184 = vector.broadcast %cst_47 : f32 to vector<1x512xf32>
    %185 = arith.addf %182, %184 : vector<1x512xf32>
    %186 = math.rsqrt %185 : vector<1x512xf32>
    %187 = arith.mulf %183, %186 : vector<1x512xf32>
    %188 = vector.extract_strided_slice %86 {offsets = [1, 0], sizes = [1, 512], strides = [1, 1]} : vector<2x512xf32> to vector<1x512xf32>
    %189 = arith.mulf %173, %187 : vector<1x512xf32>
    %190 = arith.subf %188, %189 : vector<1x512xf32>
    %191 = vector.broadcast %187 : vector<1x512xf32> to vector<8x512xf32>
    %192 = arith.mulf %169, %191 : vector<8x512xf32>
    %193 = vector.broadcast %190 : vector<1x512xf32> to vector<8x512xf32>
    %194 = arith.addf %192, %193 : vector<8x512xf32>
    %cst_48 = arith.constant 0.000000e+00 : f32
    %195 = vector.broadcast %cst_48 : f32 to vector<8x512xf32>
    %196 = arith.maximumf %194, %195 : vector<8x512xf32>
    %cst_49 = arith.constant dense<0.000000e+00> : vector<8x64xf32>
    %197 = tpu.matmul %196, %87, %cst_49 {dimension_numbers = #tpu.dot_dimension_numbers<[1], [0], [0], [1], [0, 0, 1, 1], [], []>} : vector<8x512xf32>, vector<512x64xf32>, vector<8x64xf32> -> vector<8x64xf32>
    %198 = vector.broadcast %88 : vector<1x64xf32> to vector<8x64xf32>
    %199 = arith.addf %197, %198 : vector<8x64xf32>
    %200 = vector.extract_strided_slice %199 {offsets = [0, 0], sizes = [8, 32], strides = [1, 1]} : vector<8x64xf32> to vector<8x32xf32>
    %201 = vector.extract_strided_slice %199 {offsets = [0, 32], sizes = [8, 32], strides = [1, 1]} : vector<8x64xf32> to vector<8x32xf32>
    %cst_50 = arith.constant 0.000000e+00 : f32
    %202 = vector.broadcast %cst_50 : f32 to vector<8x32xf32>
    %203 = arith.maximumf %201, %202 : vector<8x32xf32>
    %204 = math.absf %201 : vector<8x32xf32>
    %cst_51 = arith.constant 0.000000e+00 : f32
    %205 = vector.broadcast %cst_51 : f32 to vector<8x32xf32>
    %206 = arith.subf %205, %204 : vector<8x32xf32>
    %207 = math.exp %206 : vector<8x32xf32>
    %cst_52 = arith.constant 1.000000e+00 : f32
    %208 = vector.broadcast %cst_52 : f32 to vector<8x32xf32>
    %209 = arith.addf %208, %207 : vector<8x32xf32>
    %210 = math.log %209 : vector<8x32xf32>
    %211 = arith.addf %203, %210 : vector<8x32xf32>
    %212 = arith.mulf %211, %83 : vector<8x32xf32>
    %213 = arith.addf %200, %212 : vector<8x32xf32>
    %214 = tpu.concatenate %213, %200, %211, %83 in 1 : vector<8x32xf32>, vector<8x32xf32>, vector<8x32xf32>, vector<8x32xf32> -> vector<8x128xf32>
    %c0_53 = arith.constant 0 : index
    %c0_54 = arith.constant 0 : index
    %215 = vector.load %arg6[%c0_53, %c0_54] : memref<8x128xf32, #tpu.memory_space<vmem>>, vector<8x128xf32>
    tpu.vector_store %arg6[%c0_53, %c0_54], %214 {strides = array<i32>} : memref<8x128xf32, #tpu.memory_space<vmem>>, vector<8x128xf32>,
    return
  }
}

module attributes {stable_mosaic.version = 11 : i64} {
  func.func @_kernel_host_eps(%arg0: memref<8x1xi32, #tpu.memory_space<vmem>>, %arg1: memref<10x512xf32, #tpu.memory_space<vmem>>, %arg2: memref<2x512xf32, #tpu.memory_space<vmem>>, %arg3: memref<512x64xf32, #tpu.memory_space<vmem>>, %arg4: memref<1x64xf32, #tpu.memory_space<vmem>>, %arg5: memref<8x32xf32, #tpu.memory_space<vmem>>, %arg6: memref<8x128xf32, #tpu.memory_space<vmem>>) attributes {dimension_semantics = [], scalar_prefetch = 0 : i64, scratch_operands = 0 : i64, tpu.core_type = #tpu.core_type<tc>} {
    %c0 = arith.constant 0 : index
    %c0_0 = arith.constant 0 : index
    %0 = vector.load %arg0[%c0, %c0_0] : memref<8x1xi32, #tpu.memory_space<vmem>>, vector<8x1xi32>
    %c0_1 = arith.constant 0 : index
    %c0_2 = arith.constant 0 : index
    %1 = vector.load %arg1[%c0_1, %c0_2] : memref<10x512xf32, #tpu.memory_space<vmem>>, vector<10x512xf32>
    %c0_3 = arith.constant 0 : index
    %c0_4 = arith.constant 0 : index
    %2 = vector.load %arg2[%c0_3, %c0_4] : memref<2x512xf32, #tpu.memory_space<vmem>>, vector<2x512xf32>
    %c0_5 = arith.constant 0 : index
    %c0_6 = arith.constant 0 : index
    %3 = vector.load %arg3[%c0_5, %c0_6] : memref<512x64xf32, #tpu.memory_space<vmem>>, vector<512x64xf32>
    %c0_7 = arith.constant 0 : index
    %c0_8 = arith.constant 0 : index
    %4 = vector.load %arg4[%c0_7, %c0_8] : memref<1x64xf32, #tpu.memory_space<vmem>>, vector<1x64xf32>
    %c0_9 = arith.constant 0 : index
    %c0_10 = arith.constant 0 : index
    %5 = vector.load %arg5[%c0_9, %c0_10] : memref<8x32xf32, #tpu.memory_space<vmem>>, vector<8x32xf32>
    %cst = arith.constant 0.000000e+00 : f32
    %6 = vector.broadcast %cst : f32 to vector<8x512xf32>
    %c0_i32 = arith.constant 0 : i32
    %7 = vector.broadcast %c0_i32 : i32 to vector<8x1xi32>
    %8 = arith.cmpi eq, %0, %7 : vector<8x1xi32>
    %9 = vector.extract_strided_slice %1 {offsets = [0, 0], sizes = [1, 512], strides = [1, 1]} : vector<10x512xf32> to vector<1x512xf32>
    %10 = vector.shape_cast %8 : vector<8x1xi1> to vector<8x1xi1>
    %11 = vector.broadcast %10 : vector<8x1xi1> to vector<8x512xi1>
    %12 = vector.shape_cast %9 : vector<1x512xf32> to vector<1x512xf32>
    %13 = vector.broadcast %12 : vector<1x512xf32> to vector<8x512xf32>
    %14 = arith.select %11, %13, %6 : vector<8x512xi1>, vector<8x512xf32>
    %c1_i32 = arith.constant 1 : i32
    %15 = vector.broadcast %c1_i32 : i32 to vector<8x1xi32>
    %16 = arith.cmpi eq, %0, %15 : vector<8x1xi32>
    %17 = vector.extract_strided_slice %1 {offsets = [1, 0], sizes = [1, 512], strides = [1, 1]} : vector<10x512xf32> to vector<1x512xf32>
    %18 = vector.shape_cast %16 : vector<8x1xi1> to vector<8x1xi1>
    %19 = vector.broadcast %18 : vector<8x1xi1> to vector<8x512xi1>
    %20 = vector.shape_cast %17 : vector<1x512xf32> to vector<1x512xf32>
    %21 = vector.broadcast %20 : vector<1x512xf32> to vector<8x512xf32>
    %22 = arith.select %19, %21, %14 : vector<8x512xi1>, vector<8x512xf32>
    %c2_i32 = arith.constant 2 : i32
    %23 = vector.broadcast %c2_i32 : i32 to vector<8x1xi32>
    %24 = arith.cmpi eq, %0, %23 : vector<8x1xi32>
    %25 = vector.extract_strided_slice %1 {offsets = [2, 0], sizes = [1, 512], strides = [1, 1]} : vector<10x512xf32> to vector<1x512xf32>
    %26 = vector.shape_cast %24 : vector<8x1xi1> to vector<8x1xi1>
    %27 = vector.broadcast %26 : vector<8x1xi1> to vector<8x512xi1>
    %28 = vector.shape_cast %25 : vector<1x512xf32> to vector<1x512xf32>
    %29 = vector.broadcast %28 : vector<1x512xf32> to vector<8x512xf32>
    %30 = arith.select %27, %29, %22 : vector<8x512xi1>, vector<8x512xf32>
    %c3_i32 = arith.constant 3 : i32
    %31 = vector.broadcast %c3_i32 : i32 to vector<8x1xi32>
    %32 = arith.cmpi eq, %0, %31 : vector<8x1xi32>
    %33 = vector.extract_strided_slice %1 {offsets = [3, 0], sizes = [1, 512], strides = [1, 1]} : vector<10x512xf32> to vector<1x512xf32>
    %34 = vector.shape_cast %32 : vector<8x1xi1> to vector<8x1xi1>
    %35 = vector.broadcast %34 : vector<8x1xi1> to vector<8x512xi1>
    %36 = vector.shape_cast %33 : vector<1x512xf32> to vector<1x512xf32>
    %37 = vector.broadcast %36 : vector<1x512xf32> to vector<8x512xf32>
    %38 = arith.select %35, %37, %30 : vector<8x512xi1>, vector<8x512xf32>
    %c4_i32 = arith.constant 4 : i32
    %39 = vector.broadcast %c4_i32 : i32 to vector<8x1xi32>
    %40 = arith.cmpi eq, %0, %39 : vector<8x1xi32>
    %41 = vector.extract_strided_slice %1 {offsets = [4, 0], sizes = [1, 512], strides = [1, 1]} : vector<10x512xf32> to vector<1x512xf32>
    %42 = vector.shape_cast %40 : vector<8x1xi1> to vector<8x1xi1>
    %43 = vector.broadcast %42 : vector<8x1xi1> to vector<8x512xi1>
    %44 = vector.shape_cast %41 : vector<1x512xf32> to vector<1x512xf32>
    %45 = vector.broadcast %44 : vector<1x512xf32> to vector<8x512xf32>
    %46 = arith.select %43, %45, %38 : vector<8x512xi1>, vector<8x512xf32>
    %c5_i32 = arith.constant 5 : i32
    %47 = vector.broadcast %c5_i32 : i32 to vector<8x1xi32>
    %48 = arith.cmpi eq, %0, %47 : vector<8x1xi32>
    %49 = vector.extract_strided_slice %1 {offsets = [5, 0], sizes = [1, 512], strides = [1, 1]} : vector<10x512xf32> to vector<1x512xf32>
    %50 = vector.shape_cast %48 : vector<8x1xi1> to vector<8x1xi1>
    %51 = vector.broadcast %50 : vector<8x1xi1> to vector<8x512xi1>
    %52 = vector.shape_cast %49 : vector<1x512xf32> to vector<1x512xf32>
    %53 = vector.broadcast %52 : vector<1x512xf32> to vector<8x512xf32>
    %54 = arith.select %51, %53, %46 : vector<8x512xi1>, vector<8x512xf32>
    %c6_i32 = arith.constant 6 : i32
    %55 = vector.broadcast %c6_i32 : i32 to vector<8x1xi32>
    %56 = arith.cmpi eq, %0, %55 : vector<8x1xi32>
    %57 = vector.extract_strided_slice %1 {offsets = [6, 0], sizes = [1, 512], strides = [1, 1]} : vector<10x512xf32> to vector<1x512xf32>
    %58 = vector.shape_cast %56 : vector<8x1xi1> to vector<8x1xi1>
    %59 = vector.broadcast %58 : vector<8x1xi1> to vector<8x512xi1>
    %60 = vector.shape_cast %57 : vector<1x512xf32> to vector<1x512xf32>
    %61 = vector.broadcast %60 : vector<1x512xf32> to vector<8x512xf32>
    %62 = arith.select %59, %61, %54 : vector<8x512xi1>, vector<8x512xf32>
    %c7_i32 = arith.constant 7 : i32
    %63 = vector.broadcast %c7_i32 : i32 to vector<8x1xi32>
    %64 = arith.cmpi eq, %0, %63 : vector<8x1xi32>
    %65 = vector.extract_strided_slice %1 {offsets = [7, 0], sizes = [1, 512], strides = [1, 1]} : vector<10x512xf32> to vector<1x512xf32>
    %66 = vector.shape_cast %64 : vector<8x1xi1> to vector<8x1xi1>
    %67 = vector.broadcast %66 : vector<8x1xi1> to vector<8x512xi1>
    %68 = vector.shape_cast %65 : vector<1x512xf32> to vector<1x512xf32>
    %69 = vector.broadcast %68 : vector<1x512xf32> to vector<8x512xf32>
    %70 = arith.select %67, %69, %62 : vector<8x512xi1>, vector<8x512xf32>
    %c8_i32 = arith.constant 8 : i32
    %71 = vector.broadcast %c8_i32 : i32 to vector<8x1xi32>
    %72 = arith.cmpi eq, %0, %71 : vector<8x1xi32>
    %73 = vector.extract_strided_slice %1 {offsets = [8, 0], sizes = [1, 512], strides = [1, 1]} : vector<10x512xf32> to vector<1x512xf32>
    %74 = vector.shape_cast %72 : vector<8x1xi1> to vector<8x1xi1>
    %75 = vector.broadcast %74 : vector<8x1xi1> to vector<8x512xi1>
    %76 = vector.shape_cast %73 : vector<1x512xf32> to vector<1x512xf32>
    %77 = vector.broadcast %76 : vector<1x512xf32> to vector<8x512xf32>
    %78 = arith.select %75, %77, %70 : vector<8x512xi1>, vector<8x512xf32>
    %c9_i32 = arith.constant 9 : i32
    %79 = vector.broadcast %c9_i32 : i32 to vector<8x1xi32>
    %80 = arith.cmpi eq, %0, %79 : vector<8x1xi32>
    %81 = vector.extract_strided_slice %1 {offsets = [9, 0], sizes = [1, 512], strides = [1, 1]} : vector<10x512xf32> to vector<1x512xf32>
    %82 = vector.shape_cast %80 : vector<8x1xi1> to vector<8x1xi1>
    %83 = vector.broadcast %82 : vector<8x1xi1> to vector<8x512xi1>
    %84 = vector.shape_cast %81 : vector<1x512xf32> to vector<1x512xf32>
    %85 = vector.broadcast %84 : vector<1x512xf32> to vector<8x512xf32>
    %86 = arith.select %83, %85, %78 : vector<8x512xi1>, vector<8x512xf32>
    %cst_11 = arith.constant dense<0.000000e+00> : vector<512xf32>
    %87 = vector.multi_reduction <add>, %86, %cst_11 [0] : vector<8x512xf32> to vector<512xf32>
    %88 = vector.shape_cast %87 : vector<512xf32> to vector<1x512xf32>
    %cst_12 = arith.constant 1.250000e-01 : f32
    %89 = vector.broadcast %cst_12 : f32 to vector<1x512xf32>
    %90 = arith.mulf %88, %89 : vector<1x512xf32>
    %91 = arith.mulf %86, %86 : vector<8x512xf32>
    %cst_13 = arith.constant dense<0.000000e+00> : vector<512xf32>
    %92 = vector.multi_reduction <add>, %91, %cst_13 [0] : vector<8x512xf32> to vector<512xf32>
    %93 = vector.shape_cast %92 : vector<512xf32> to vector<1x512xf32>
    %cst_14 = arith.constant 1.250000e-01 : f32
    %94 = vector.broadcast %cst_14 : f32 to vector<1x512xf32>
    %95 = arith.mulf %93, %94 : vector<1x512xf32>
    %96 = arith.mulf %90, %90 : vector<1x512xf32>
    %97 = arith.subf %95, %96 : vector<1x512xf32>
    %cst_15 = arith.constant 0.000000e+00 : f32
    %98 = vector.broadcast %cst_15 : f32 to vector<1x512xf32>
    %99 = arith.maximumf %97, %98 : vector<1x512xf32>
    %100 = vector.extract_strided_slice %2 {offsets = [0, 0], sizes = [1, 512], strides = [1, 1]} : vector<2x512xf32> to vector<1x512xf32>
    %cst_16 = arith.constant 9.99999974E-6 : f32
    %101 = vector.broadcast %cst_16 : f32 to vector<1x512xf32>
    %102 = arith.addf %99, %101 : vector<1x512xf32>
    %103 = math.rsqrt %102 : vector<1x512xf32>
    %104 = arith.mulf %100, %103 : vector<1x512xf32>
    %105 = vector.extract_strided_slice %2 {offsets = [1, 0], sizes = [1, 512], strides = [1, 1]} : vector<2x512xf32> to vector<1x512xf32>
    %106 = arith.mulf %90, %104 : vector<1x512xf32>
    %107 = arith.subf %105, %106 : vector<1x512xf32>
    %108 = vector.broadcast %104 : vector<1x512xf32> to vector<8x512xf32>
    %109 = arith.mulf %86, %108 : vector<8x512xf32>
    %110 = vector.broadcast %107 : vector<1x512xf32> to vector<8x512xf32>
    %111 = arith.addf %109, %110 : vector<8x512xf32>
    %cst_17 = arith.constant 0.000000e+00 : f32
    %112 = vector.broadcast %cst_17 : f32 to vector<8x512xf32>
    %113 = arith.maximumf %111, %112 : vector<8x512xf32>
    %cst_18 = arith.constant dense<0.000000e+00> : vector<8x64xf32>
    %114 = tpu.matmul %113, %3, %cst_18 {dimension_numbers = #tpu.dot_dimension_numbers<[1], [0], [0], [1], [0, 0, 1, 1], [], []>} : vector<8x512xf32>, vector<512x64xf32>, vector<8x64xf32> -> vector<8x64xf32>
    %115 = vector.broadcast %4 : vector<1x64xf32> to vector<8x64xf32>
    %116 = arith.addf %114, %115 : vector<8x64xf32>
    %117 = vector.extract_strided_slice %116 {offsets = [0, 0], sizes = [8, 32], strides = [1, 1]} : vector<8x64xf32> to vector<8x32xf32>
    %118 = vector.extract_strided_slice %116 {offsets = [0, 32], sizes = [8, 32], strides = [1, 1]} : vector<8x64xf32> to vector<8x32xf32>
    %cst_19 = arith.constant 0.000000e+00 : f32
    %119 = vector.broadcast %cst_19 : f32 to vector<8x32xf32>
    %120 = arith.maximumf %118, %119 : vector<8x32xf32>
    %121 = math.absf %118 : vector<8x32xf32>
    %cst_20 = arith.constant 0.000000e+00 : f32
    %122 = vector.broadcast %cst_20 : f32 to vector<8x32xf32>
    %123 = arith.subf %122, %121 : vector<8x32xf32>
    %124 = math.exp %123 : vector<8x32xf32>
    %cst_21 = arith.constant 1.000000e+00 : f32
    %125 = vector.broadcast %cst_21 : f32 to vector<8x32xf32>
    %126 = arith.addf %125, %124 : vector<8x32xf32>
    %127 = math.log %126 : vector<8x32xf32>
    %128 = arith.addf %120, %127 : vector<8x32xf32>
    %129 = arith.mulf %128, %5 : vector<8x32xf32>
    %130 = arith.addf %117, %129 : vector<8x32xf32>
    %131 = tpu.concatenate %130, %117, %128, %5 in 1 : vector<8x32xf32>, vector<8x32xf32>, vector<8x32xf32>, vector<8x32xf32> -> vector<8x128xf32>
    %c0_22 = arith.constant 0 : index
    %c0_23 = arith.constant 0 : index
    %132 = vector.load %arg6[%c0_22, %c0_23] : memref<8x128xf32, #tpu.memory_space<vmem>>, vector<8x128xf32>
    tpu.vector_store %arg6[%c0_22, %c0_23], %131 {strides = array<i32>} : memref<8x128xf32, #tpu.memory_space<vmem>>, vector<8x128xf32>,
    return
  }
}

</mosaic_0001>

<bundles_post_ra>
// kernel: prob_generator_forward.1
= control target key start
LH: loop header
LB: loop body
LE: loop exit
PB: predicated region body
PF: predicated region fallthrough
CT: control target
= control target key end

     0   :  { %v1117_v0 = vmov 0   ;;  %v25_v8 = vlaneseq  ;;  %s1129_s15 = smov 96   ;;  %s1655_s1 = inlined_call_operand.vmem [shape: s32[8,1], index: 1, kind: input, shape index: {}]   ;;  %s1656_s0 = inlined_call_operand.<no memory space> [shape: s32[1], index: 0, kind: input, shape index: {}]   ;;  %s1657_s4 = inlined_call_operand.vmem [shape: f32[512,64], index: 4, kind: input, shape index: {}]   ;;  %s1658_s2 = inlined_call_operand.vmem [shape: f32[10,512], index: 2, kind: input, shape index: {}]   ;;  %s1659_s3 = inlined_call_operand.vmem [shape: f32[2,512], index: 3, kind: input, shape index: {}]   ;;  %s1660_s5 = inlined_call_operand.vmem [shape: f32[1,64], index: 5, kind: input, shape index: {}]   ;;  %s1661_s6 = inlined_call_operand.vmem [shape: f32[8,128], index: 6, kind: output, shape index: {}]  }
   0x1   :  { %1100 = vset.pattern.permute.xlu1 %v1117_v0  ;;  %1099 = vset.pattern.permute.xlu0 %v1117_v0  ;;  %v209_v1 = vld [vmem:[%s1655_s1] sm:$0xff]  ;;  %v1171_v9 = vstv %s1656_s0  ;;  %v236_v41 = vld [vmem:[%s1657_s4 + $0x88] sm:$0xff]  ;;  %v237_v54 = vld [vmem:[%s1657_s4 + $0x90] sm:$0xff] }
   0x2   :  { %vm336_vm0 = vcmp.eq.s32.totalorder %v209_v1, 2  ;;  %vm284_vm1 = vcmp.eq.s32.totalorder %v209_v1, 0  ;;  %vm362_vm2 = vcmp.eq.s32.totalorder %v209_v1, 3  ;;  %vm310_vm3 = vcmp.eq.s32.totalorder %v209_v1, 1  ;;  %v235_v40 = vld [vmem:[%s1657_s4 + $0x80] sm:$0xff]  ;;  %v268_v47 = vld [vmem:[%s1657_s4 + $0x188] sm:$0xff] }
   0x3   :  { %v337_v2 = vsel %vm336_vm0, 1, %v1117_v0  ;;  %v285_v3 = vsel %vm284_vm1, 1, %v1117_v0  ;;  %v363_v4 = vsel %vm362_vm2, 1, %v1117_v0  ;;  %v311_v5 = vsel %vm310_vm3, 1, %v1117_v0  ;;  %v267_v42 = vld [vmem:[%s1657_s4 + $0x180] sm:$0xff]  ;;  %v220_v49 = vld [vmem:[%s1657_s4 + $0x8] sm:$0xff] }
   0x4   :  { %339 = vperm.xlu1 %1100, %v337_v2   ;;  %287 = vperm.xlu0 %1099, %v285_v3   ;;  %vm414_vm4 = vcmp.eq.s32.totalorder %v209_v1, 5  ;;  %vm388_vm5 = vcmp.eq.s32.totalorder %v209_v1, 4  ;;  %vm466_vm6 = vcmp.eq.s32.totalorder %v209_v1, 7  ;;  %vm440_vm7 = vcmp.eq.s32.totalorder %v209_v1, 6  ;;  %v219_v48 = vld [vmem:[%s1657_s4] sm:$0xff]  ;;  %v252_v53 = vld [vmem:[%s1657_s4 + $0x108] sm:$0xff] }
   0x5   :  { %v415_v6 = vsel %vm414_vm4, 1, %v1117_v0  ;;  %v389_v7 = vsel %vm388_vm5, 1, %v1117_v0  ;;  %v467_v10 = vsel %vm466_vm6, 1, %v1117_v0  ;;  %v441_v11 = vsel %vm440_vm7, 1, %v1117_v0  ;;  %v251_v52 = vld [vmem:[%s1657_s4 + $0x100] sm:$0xff]  ;;  %v238_v57 = vld [vmem:[%s1657_s4 + $0x98] sm:$0xff] }
   0x6   :  { %vm518_vm8 = vcmp.eq.s32.totalorder %v209_v1, 9  ;;  %vm492_vm9 = vcmp.eq.s32.totalorder %v209_v1, 8  ;;  %v29_v12 = vadd.s32 %v1171_v9, %v25_v8  ;;  %v27_v29 = vxor.u32 %v1171_v9, %v1171_v9  ;;  %v269_v58 = vld [vmem:[%s1657_s4 + $0x190] sm:$0xff]  ;;  %v270_v59 = vld [vmem:[%s1657_s4 + $0x198] sm:$0xff] }
   0x7   :  { %v519_v13 = vsel %vm518_vm8, 1, %v1117_v0  ;;  %v493_v14 = vsel %vm492_vm9, 1, %v1117_v0  ;;  %v1022_v46 = vpack.c.bf16 %v236_v41, %v235_v40  ;;  %v1054_v50 = vpack.c.bf16 %v268_v47, %v267_v42  ;;  %v221_v62 = vld [vmem:[%s1657_s4 + $0x10] sm:$0xff]  ;;  %v222_v63 = vld [vmem:[%s1657_s4 + $0x18] sm:$0xff]  ;;  %v243_v47 = vld [vmem:[%s1657_s4 + $0xc0] sm:$0xff] }
   0x8   :  { %365 = vperm.xlu1 %1100, %v363_v4   ;;  %313 = vperm.xlu0 %1099, %v311_v5   ;;  %v31_v15 = vshll.u32 %v29_v12, 13  ;;  %v32_v16 = vshrl.u32 %v29_v12, 19  ;;  %v30_v17 = vadd.s32 %v29_v12, %v29_v12  ;;  %v1177_v34 = vxor.u32 466688986, %v27_v29  ;;  %v253_v0 = vld [vmem:[%s1657_s4 + $0x110] sm:$0xff]  ;;  %v254_v3 = vld [vmem:[%s1657_s4 + $0x118] sm:$0xff] }
   0x9   :  { %v1024_v51 = vpack.c.bf16 %v220_v49, %v219_v48  ;;  %1023 = vmatprep.subr.bf16.mxu0 %v1022_v46  ;;  %v1056_v56 = vpack.c.bf16 %v252_v53, %v251_v52  ;;  %1055 = vmatprep.subr.bf16.mxu1 %v1054_v50  ;;  %v1026_v60 = vpack.c.bf16 %v238_v57, %v237_v54  ;;  %v244_v48 = vld [vmem:[%s1657_s4 + $0xc8] sm:$0xff]  ;;  %v275_v49 = vld [vmem:[%s1657_s4 + $0x1c0] sm:$0xff]  ;;  %vm937_vm9 = vcmask 261120  }
   0xa   :  { %v33_v18 = vor.u32 %v32_v16, %v31_v15  ;;  %v1058_v61 = vpack.c.bf16 %v270_v59, %v269_v58  ;;  %v1028_v2 = vpack.c.bf16 %v222_v63, %v221_v62  ;;  %v1060_v4 = vpack.c.bf16 %v254_v3, %v253_v0  ;;  %v239_v16 = vld [vmem:[%s1657_s4 + $0xa0] sm:$0xff]  ;;  %v228_v53 = vld [vmem:[%s1657_s4 + $0x48] sm:$0xff]  ;;  %v245_v62 = vld [vmem:[%s1657_s4 + $0xd0] sm:$0xff] }
   0xb   :  { %1025 = vmatpush3.bf16.msra.mxu0 %v1024_v51  ;;  %1057 = vmatpush3.bf16.msra.mxu1 %v1056_v56  ;;  %v1038_v50 = vpack.c.bf16 %v244_v48, %v243_v47  ;;  %v276_v51 = vld [vmem:[%s1657_s4 + $0x1c8] sm:$0xff]  ;;  %v227_v52 = vld [vmem:[%s1657_s4 + $0x40] sm:$0xff]  ;;  %v246_v63 = vld [vmem:[%s1657_s4 + $0xd8] sm:$0xff] }
   0xc   :  { %417 = vperm.xlu1 %1100, %v415_v6   ;;  %391 = vperm.xlu0 %1099, %v389_v7   ;;  %v34_v19 = vxor.u32 %v33_v18, %v30_v17  ;;  %v271_v18 = vld [vmem:[%s1657_s4 + $0x1a0] sm:$0xff]  ;;  %v1070_v56 = vpack.c.bf16 %v276_v51, %v275_v49  ;;  %v1040_v57 = vpack.c.bf16 %v228_v53, %v227_v52  ;;  %v260_v59 = vld [vmem:[%s1657_s4 + $0x148] sm:$0xff]  ;;  %v277_v0 = vld [vmem:[%s1657_s4 + $0x1d0] sm:$0xff] }
   0xd   :  { %1027 = vmatprep.subr.bf16.mxu0 %v1026_v60  ;;  %1059 = vmatprep.subr.bf16.mxu1 %v1058_v61  ;;  %v259_v58 = vld [vmem:[%s1657_s4 + $0x140] sm:$0xff]  ;;  %v229_v3 = vld [vmem:[%s1657_s4 + $0x50] sm:$0xff] }
   0xe   :  { %v35_v20 = vadd.s32 %v34_v19, %v30_v17  ;;  %v36_v21 = vshll.u32 %v34_v19, 15  ;;  %v37_v22 = vshrl.u32 %v34_v19, 17  ;;  %v240_v17 = vld [vmem:[%s1657_s4 + $0xa8] sm:$0xff]  ;;  %v1072_v60 = vpack.c.bf16 %v260_v59, %v259_v58 }
   0xf   :  { %1029 = vmatpush3.bf16.msra.mxu0 %v1028_v2  ;;  %1061 = vmatpush3.bf16.msra.mxu1 %v1060_v4  ;;  %v1030_v19 = vpack.c.bf16 %v240_v17, %v239_v16  ;;  %v278_v2 = vld [vmem:[%s1657_s4 + $0x1d8] sm:$0xff]  ;;  %v247_v16 = vld [vmem:[%s1657_s4 + $0xe0] sm:$0xff]  ;;  %v248_v17 = vld [vmem:[%s1657_s4 + $0xe8] sm:$0xff] }
  0x10   :  { %469 = vperm.xlu1 %1100, %v467_v10   ;;  %443 = vperm.xlu0 %1099, %v441_v11   ;;  %v38_v23 = vor.u32 %v37_v22, %v36_v21  ;;  %v223_v21 = vld [vmem:[%s1657_s4 + $0x20] sm:$0xff]  ;;  %v224_v22 = vld [vmem:[%s1657_s4 + $0x28] sm:$0xff]  ;;  %v230_v4 = vld [vmem:[%s1657_s4 + $0x58] sm:$0xff] }
  0x11   :  { %1031 = vmatprep.subr.bf16.mxu0 %v1030_v19  ;;  %v1046_v19 = vpack.c.bf16 %v248_v17, %v247_v16  ;;  %v1391_v16 = vld [vmem:[%s1658_s2 + $0x8] sm:$0xff]  ;;  %v1399_v17 = vld [vmem:[%s1658_s2 + $0x10] sm:$0xff] }
  0x12   :  { %v39_v24 = vxor.u32 %v38_v23, %v35_v20 }
  0x14   :  { %521 = vperm.xlu1 %1100, %v519_v13   ;;  %495 = vperm.xlu0 %1099, %v493_v14   ;;  %v40_v25 = vadd.s32 %v39_v24, %v35_v20  ;;  %v41_v26 = vshll.u32 %v39_v24, 26  ;;  %v42_v27 = vshrl.u32 %v39_v24, 6  ;;  %v272_v20 = vld [vmem:[%s1657_s4 + $0x1a8] sm:$0xff] }
  0x15   :  { %v1062_v24 = vpack.c.bf16 %v272_v20, %v271_v18  ;;  %v279_v18 = vld [vmem:[%s1657_s4 + $0x1e0] sm:$0xff]  ;;  %v280_v20 = vld [vmem:[%s1657_s4 + $0x1e8] sm:$0xff] }
  0x16   :  { %v43_v28 = vor.u32 %v42_v27, %v41_v26  ;;  %v255_v26 = vld [vmem:[%s1657_s4 + $0x120] sm:$0xff]  ;;  %v256_v27 = vld [vmem:[%s1657_s4 + $0x128] sm:$0xff] }
  0x17   :  { %1063 = vmatprep.subr.bf16.mxu1 %v1062_v24  ;;  %v1078_v24 = vpack.c.bf16 %v280_v20, %v279_v18  ;;  %v1404_v18 = vld [vmem:[%s1658_s2 + $0x18] sm:$0xff] }
  0x18   :  { %v44_v30 = vxor.u32 %v43_v28, %v40_v25  ;;  %v1064_v28 = vpack.c.bf16 %v256_v27, %v255_v26  ;;  %v263_v26 = vld [vmem:[%s1657_s4 + $0x160] sm:$0xff]  ;;  %v264_v27 = vld [vmem:[%s1657_s4 + $0x168] sm:$0xff] }
  0x1a   :  { %v45_v31 = vadd.s32 %v44_v30, %v40_v25  ;;  %v46_v32 = vshll.u32 %v44_v30, 6  ;;  %v47_v33 = vshrl.u32 %v44_v30, 26  ;;  %v1032_v25 = vpack.c.bf16 %v224_v22, %v223_v21  ;;  %1065 = vmatpush3.bf16.msra.mxu1 %v1064_v28  ;;  %v231_v21 = vld [vmem:[%s1657_s4 + $0x60] sm:$0xff]  ;;  %v232_v22 = vld [vmem:[%s1657_s4 + $0x68] sm:$0xff]  ;;  %v249_v28 = vld [vmem:[%s1657_s4 + $0xf0] sm:$0xff] }
  0x1c   :  { %v48_v35 = vor.u32 %v47_v33, %v46_v32  ;;  %v50_v37 = vadd.s32 %v45_v31, %v1171_v9  ;;  %1033 = vmatpush3.bf16.msra.mxu0 %v1032_v25  ;;  %v241_v32 = vld [vmem:[%s1657_s4 + $0xb0] sm:$0xff]  ;;  %v242_v33 = vld [vmem:[%s1657_s4 + $0xb8] sm:$0xff]  ;;  %v1048_v25 = vpack.c.bf16 %v232_v22, %v231_v21 }
  0x1e   :  { %v49_v36 = vxor.u32 %v48_v35, %v45_v31  ;;  %v273_v35 = vld [vmem:[%s1657_s4 + $0x1b0] sm:$0xff] }
  0x20   :  { %v51_v38 = vadd.s32 %v49_v36, %v1177_v34  ;;  %v1034_v36 = vpack.c.bf16 %v242_v33, %v241_v32  ;;  %v282_v32 = vld [vmem:[%s1657_s4 + $0x1f8] sm:$0xff] }
  0x22   :  { %v52_v39 = vadd.s32 1, %v51_v38  ;;  %v225_v38 = vld [vmem:[%s1657_s4 + $0x30] sm:$0xff]  ;;  %1035 = vmatprep.subr.bf16.mxu0 %v1034_v36 }
  0x24   :  { %v53_v43 = vadd.s32 %v52_v39, %v50_v37  ;;  %v54_v44 = vshll.u32 %v52_v39, 17  ;;  %v55_v45 = vshrl.u32 %v52_v39, 15  ;;  %v274_v37 = vld [vmem:[%s1657_s4 + $0x1b8] sm:$0xff] }
  0x25   :  { %v226_v39 = vld [vmem:[%s1657_s4 + $0x38] sm:$0xff]  ;;  %v1066_v41 = vpack.c.bf16 %v274_v37, %v273_v35 }
  0x26   :  { %v56_v55 = vor.u32 %v55_v45, %v54_v44  ;;  %v1036_v42 = vpack.c.bf16 %v226_v39, %v225_v38  ;;  %v258_v44 = vld [vmem:[%s1657_s4 + $0x138] sm:$0xff]  ;;  %v233_v38 = vld [vmem:[%s1657_s4 + $0x70] sm:$0xff] }
  0x27   :  { %1067 = vmatprep.subr.bf16.mxu1 %v1066_v41  ;;  %v234_v39 = vld [vmem:[%s1657_s4 + $0x78] sm:$0xff] }
  0x28   :  { %v57_v1 = vxor.u32 %v56_v55, %v53_v43  ;;  %1037 = vmatpush3.bf16.msra.mxu0 %v1036_v42  ;;  %v1052_v42 = vpack.c.bf16 %v234_v39, %v233_v38 }
  0x29   :  { %1039 = vmatprep.subr.bf16.mxu0 %v1038_v50 }
  0x2a   :  { %v58_v5 = vadd.s32 %v57_v1, %v53_v43  ;;  %v59_v6 = vshll.u32 %v57_v1, 29  ;;  %v60_v7 = vshrl.u32 %v57_v1, 3  ;;  %v257_v43 = vld [vmem:[%s1657_s4 + $0x130] sm:$0xff]  ;;  %v1042_v1 = vpack.c.bf16 %v246_v63, %v245_v62 }
  0x2b   :  { %v1068_v45 = vpack.c.bf16 %v258_v44, %v257_v43  ;;  %v266_v43 = vld [vmem:[%s1657_s4 + $0x178] sm:$0xff] }
  0x2c   :  { %v61_v10 = vor.u32 %v60_v7, %v59_v6  ;;  %1041 = vmatpush3.bf16.msra.mxu0 %v1040_v57 }
  0x2d   :  { %1069 = vmatpush3.bf16.msra.mxu1 %v1068_v45  ;;  %1043 = vmatprep.subr.bf16.mxu0 %v1042_v1 }
  0x2e   :  { %v62_v11 = vxor.u32 %v61_v10, %v58_v5  ;;  %1071 = vmatprep.subr.bf16.mxu1 %v1070_v56  ;;  %v1074_v10 = vpack.c.bf16 %v278_v2, %v277_v0 }
  0x30   :  { %v63_v12 = vadd.s32 %v62_v11, %v58_v5  ;;  %v64_v13 = vshll.u32 %v62_v11, 16  ;;  %v65_v14 = vshrl.u32 %v62_v11, 16  ;;  %v261_v11 = vld [vmem:[%s1657_s4 + $0x150] sm:$0xff] }
  0x31   :  { %1073 = vmatpush3.bf16.msra.mxu1 %v1072_v60 }
  0x32   :  { %v66_v15 = vor.u32 %v65_v14, %v64_v13  ;;  %v1044_v13 = vpack.c.bf16 %v230_v4, %v229_v3  ;;  %1075 = vmatprep.subr.bf16.mxu1 %v1074_v10 }
  0x34   :  { %v67_v23 = vxor.u32 %v66_v15, %v63_v12  ;;  %1045 = vmatpush3.bf16.msra.mxu0 %v1044_v13 }
  0x35   :  { %1047 = vmatprep.subr.bf16.mxu0 %v1046_v19 }
  0x36   :  { %v68_v29 = vadd.s32 %v67_v23, %v63_v12  ;;  %v69_v30 = vshll.u32 %v67_v23, 24  ;;  %v70_v31 = vshrl.u32 %v67_v23, 8  ;;  %v262_v12 = vld [vmem:[%s1657_s4 + $0x158] sm:$0xff] }
  0x37   :  { %v1076_v14 = vpack.c.bf16 %v262_v12, %v261_v11 }
  0x38   :  { %v71_v40 = vor.u32 %v70_v31, %v69_v30  ;;  %v73_v54 = vadd.s32 %v68_v29, %v1177_v34  ;;  %v250_v30 = vld [vmem:[%s1657_s4 + $0xf8] sm:$0xff]  ;;  %v281_v31 = vld [vmem:[%s1657_s4 + $0x1f0] sm:$0xff]  ;;  %1049 = vmatpush3.bf16.msra.mxu0 %v1048_v25 }
  0x39   :  { %1077 = vmatpush3.bf16.msra.mxu1 %v1076_v14  ;;  %v1050_v37 = vpack.c.bf16 %v250_v30, %v249_v28  ;;  %v1082_v41 = vpack.c.bf16 %v282_v32, %v281_v31 }
  0x3a   :  { %v72_v46 = vxor.u32 %v71_v40, %v68_v29  ;;  %v1080_v29 = vpack.c.bf16 %v264_v27, %v263_v26  ;;  %1079 = vmatprep.subr.bf16.mxu1 %v1078_v24  ;;  %v265_v40 = vld [vmem:[%s1657_s4 + $0x170] sm:$0xff] }
  0x3b   :  { %1051 = vmatprep.subr.bf16.mxu0 %v1050_v37  ;;  %v1084_v45 = vpack.c.bf16 %v266_v43, %v265_v40 }
  0x3c   :  { %v74_v55 = vadd.s32 %v72_v46, %v1171_v9  ;;  %1053 = vmatpush3.bf16.msra.mxu0 %v1052_v42 }
  0x3d   :  { %1081 = vmatpush3.bf16.msra.mxu1 %v1080_v29 }
  0x3e   :  { %v75_v61 = vadd.s32 2, %v74_v55  ;;  %1083 = vmatprep.subr.bf16.mxu1 %v1082_v41 }
  0x40   :  { %v76_v5 = vadd.s32 %v75_v61, %v73_v54  ;;  %v77_v6 = vshll.u32 %v75_v61, 13  ;;  %v78_v7 = vshrl.u32 %v75_v61, 19 }
  0x41   :  { %1085 = vmatpush3.bf16.msra.mxu1 %v1084_v45 }
  0x42   :  { %v79_v15 = vor.u32 %v78_v7, %v77_v6  ;;  %v1378_v6 = vshrl.u32 %v25_v8, 7 }
  0x44   :  { %v80_v23 = vxor.u32 %v79_v15, %v76_v5  ;;  %v1381_v13 = vsub.s32 0, %v1378_v6  ;;  %v1386_v15 = vld [vmem:[%s1658_s2] sm:$0xff]  ;;  %v1394_v8 = vsub.s32 1, %v1378_v6  ;;  %v1407_v19 = vsub.s32 2, %v1378_v6 }
  0x45   :  { %v1417_v26 = vsub.s32 4, %v1378_v6  ;;  %v1440_v40 = vsub.s32 5, %v1378_v6  ;;  %v1447_v43 = vsub.s32 6, %v1378_v6 }
  0x46   :  { %v81_v33 = vadd.s32 %v80_v23, %v76_v5  ;;  %v82_v35 = vshll.u32 %v80_v23, 15  ;;  %v83_v36 = vshrl.u32 %v80_v23, 17  ;;  %v1410_v23 = vsub.s32 3, %v1378_v6 }
  0x47   :  { %v293_v24 = vrot.slane %v1386_v15, %v1381_v13  ;;  %v297_v25 = vrot.slane %v1391_v16, %v1381_v13  ;;  %v301_v28 = vrot.slane %v1399_v17, %v1381_v13  ;;  %v305_v29 = vrot.slane %v1404_v18, %v1381_v13 }
  0x48   :  { %v84_v44 = vor.u32 %v83_v36, %v82_v35  ;;  %v319_v30 = vrot.slane %v1386_v15, %v1394_v8  ;;  %v323_v31 = vrot.slane %v1391_v16, %v1394_v8  ;;  %v327_v32 = vrot.slane %v1399_v17, %v1394_v8 }
  0x49   :  { %v345_v35 = vrot.slane %v1386_v15, %v1407_v19  ;;  %v349_v37 = vrot.slane %v1391_v16, %v1407_v19  ;;  %v353_v38 = vrot.slane %v1399_v17, %v1407_v19  ;;  %v357_v39 = vrot.slane %v1404_v18, %v1407_v19 }
  0x4a   :  { %v85_v46 = vxor.u32 %v84_v44, %v81_v33  ;;  %v371_v41 = vrot.slane %v1386_v15, %v1410_v23  ;;  %v375_v42 = vrot.slane %v1391_v16, %v1410_v23  ;;  %v379_v45 = vrot.slane %v1399_v17, %v1410_v23 }
  0x4c   :  { %v86_v47 = vadd.s32 %v85_v46, %v81_v33  ;;  %v87_v48 = vshll.u32 %v85_v46, 26  ;;  %v88_v49 = vshrl.u32 %v85_v46, 6  ;;  %v331_v33 = vrot.slane %v1404_v18, %v1394_v8 }
  0x4d   :  { %v383_v46 = vrot.slane %v1404_v18, %v1410_v23 }
  0x4e   :  { %v89_v50 = vor.u32 %v88_v49, %v87_v48  ;;  %v1457_v48 = vsub.s32 7, %v1378_v6  ;;  %v401_v49 = vrot.slane %v1391_v16, %v1417_v26 }
  0x50   :  { %v90_v51 = vxor.u32 %v89_v50, %v86_v47  ;;  %v405_v50 = vrot.slane %v1399_v17, %v1417_v26 }
  0x52   :  { %v91_v52 = vadd.s32 %v90_v51, %v86_v47  ;;  %v92_v53 = vshll.u32 %v90_v51, 6  ;;  %v93_v54 = vshrl.u32 %v90_v51, 26  ;;  %v397_v47 = vrot.slane %v1386_v15, %v1417_v26 }
  0x53   :  { %v409_v51 = vrot.slane %v1404_v18, %v1417_v26 }
  0x54   :  { %v94_v55 = vor.u32 %v93_v54, %v92_v53  ;;  %v96_v57 = vadd.s32 %v91_v52, %v1171_v9 }
  0x56   :  { %v95_v56 = vxor.u32 %v94_v55, %v91_v52  ;;  %v423_v55 = vrot.slane %v1386_v15, %v1440_v40 }
  0x58   :  { %v97_v58 = vadd.s32 %v95_v56, %v1171_v9  ;;  %v427_v56 = vrot.slane %v1391_v16, %v1440_v40 }
  0x5a   :  { %v98_v59 = vadd.s32 3, %v97_v58 }
  0x5c   :  { %v99_v60 = vadd.s32 %v98_v59, %v96_v57  ;;  %v100_v61 = vshll.u32 %v98_v59, 17  ;;  %v101_v62 = vshrl.u32 %v98_v59, 15  ;;  %v431_v57 = vrot.slane %v1399_v17, %v1440_v40 }
  0x5d   :  { %v435_v59 = vrot.slane %v1404_v18, %v1440_v40 }
  0x5e   :  { %v102_v63 = vor.u32 %v101_v62, %v100_v61  ;;  %v453_v62 = vrot.slane %v1391_v16, %v1447_v43 }
  0x60   :  { %v103_v0 = vxor.u32 %v102_v63, %v99_v60  ;;  %v457_v63 = vrot.slane %v1399_v17, %v1447_v43 }
  0x62   :  { %v104_v1 = vadd.s32 %v103_v0, %v99_v60  ;;  %v105_v2 = vshll.u32 %v103_v0, 29  ;;  %v106_v3 = vshrl.u32 %v103_v0, 3  ;;  %v449_v60 = vrot.slane %v1386_v15, %v1447_v43 }
  0x63   :  { %v461_v0 = vrot.slane %v1404_v18, %v1447_v43 }
  0x64   :  { %v107_v4 = vor.u32 %v106_v3, %v105_v2  ;;  %v479_v2 = vrot.slane %v1391_v16, %v1457_v48 }
  0x66   :  { %v108_v5 = vxor.u32 %v107_v4, %v104_v1 }
  0x68   :  { %v109_v7 = vadd.s32 %v108_v5, %v104_v1  ;;  %v110_v10 = vshll.u32 %v108_v5, 16  ;;  %v111_v11 = vshrl.u32 %v108_v5, 16  ;;  %v475_v1 = vrot.slane %v1386_v15, %v1457_v48 }
  0x6a   :  { %v112_v12 = vor.u32 %v111_v11, %v110_v10 }
  0x6c   :  { %v113_v14 = vxor.u32 %v112_v12, %v109_v7 }
  0x6e   :  { %v114_v20 = vadd.s32 %v113_v14, %v109_v7  ;;  %v115_v21 = vshll.u32 %v113_v14, 24  ;;  %v116_v22 = vshrl.u32 %v113_v14, 8 }
  0x70   :  { %v117_v27 = vor.u32 %v116_v22, %v115_v21  ;;  %v119_v58 = vadd.s32 %v114_v20, %v1171_v9 }
  0x72   :  { %v118_v36 = vxor.u32 %v117_v27, %v114_v20 }
  0x74   :  { %v120_v44 = vadd.s32 %v118_v36, %v1177_v34 }
  0x76   :  { %v121_v52 = vadd.s32 4, %v120_v44 }
  0x78   :  { %v123_v61 = vshll.u32 %v121_v52, 13  ;;  %v124_v4 = vshrl.u32 %v121_v52, 19  ;;  %v122_v14 = vadd.s32 %v121_v52, %v119_v58  ;;  %v214_v52 = vld [vmem:[%s1658_s2 + $0x20] sm:$0x3] }
  0x79   :  { %v501_v58 = vrot.slane %v214_v52, %v1381_v13 }
  0x7a   :  { %v125_v21 = vor.u32 %v124_v4, %v123_v61 }
  0x83   :  { %v340_v53 = vpop.permute.xlu1 %339  ;;  %v288_v54 = vpop.permute.xlu0 %287 }
  0x84   :  { %vm289_vm10 = vcmp.eq.s32.totalorder %v288_v54, 1  ;;  %vm341_vm11 = vcmp.eq.s32.totalorder %v340_v53, 1 }
  0x85   :  { %v306_v5 = vsel %vm289_vm10, %v293_v24, 0.0  ;;  %v307_v7 = vsel %vm289_vm10, %v297_v25, 0.0  ;;  %v308_v10 = vsel %vm289_vm10, %v301_v28, 0.0  ;;  %v309_v20 = vsel %vm289_vm10, %v305_v29, 0.0 }
  0x86   :  { %vm939_vm10 = vcmask 523264  }
  0x87   :  { %v366_v11 = vpop.permute.xlu1 %365  ;;  %v314_v12 = vpop.permute.xlu0 %313 }
  0x88   :  { %vm367_vm12 = vcmp.eq.s32.totalorder %v366_v11, 1  ;;  %vm315_vm13 = vcmp.eq.s32.totalorder %v314_v12, 1 }
  0x89   :  { %v332_v22 = vsel %vm315_vm13, %v319_v30, %v306_v5  ;;  %v333_v27 = vsel %vm315_vm13, %v323_v31, %v307_v7  ;;  %v334_v36 = vsel %vm315_vm13, %v327_v32, %v308_v10  ;;  %v335_v44 = vsel %vm315_vm13, %v331_v33, %v309_v20 }
  0x8a   :  { %v358_v3 = vsel %vm341_vm11, %v345_v35, %v332_v22  ;;  %v359_v24 = vsel %vm341_vm11, %v349_v37, %v333_v27  ;;  %v360_v25 = vsel %vm341_vm11, %v353_v38, %v334_v36  ;;  %v361_v28 = vsel %vm341_vm11, %v357_v39, %v335_v44  ;;  %v1506_v35 = vld [vmem:[%s1658_s2 + $0x28] sm:$0x3]  ;;  %v216_v37 = vld [vmem:[%s1658_s2 + $0x30] sm:$0x3]  ;;  %v217_v38 = vld [vmem:[%s1658_s2 + $0x38] sm:$0x3] }
  0x8b   :  { %v418_v29 = vpop.permute.xlu1 %417  ;;  %v384_v54 = vsel %vm367_vm12, %v371_v41, %v358_v3  ;;  %v385_v30 = vsel %vm367_vm12, %v375_v42, %v359_v24  ;;  %v386_v31 = vsel %vm367_vm12, %v379_v45, %v360_v25  ;;  %v387_v32 = vsel %vm367_vm12, %v383_v46, %v361_v28  ;;  %v392_v33 = vpop.permute.xlu0 %391 }
  0x8c   :  { %vm419_vm14 = vcmp.eq.s32.totalorder %v418_v29, 1  ;;  %vm393_vm15 = vcmp.eq.s32.totalorder %v392_v33, 1  ;;  %v487_v39 = vrot.slane %v1404_v18, %v1457_v48  ;;  %v126_v41 = vxor.u32 %v125_v21, %v122_v14 }
  0x8d   :  { %v410_v42 = vsel %vm393_vm15, %v397_v47, %v384_v54  ;;  %v411_v45 = vsel %vm393_vm15, %v401_v49, %v385_v30  ;;  %v412_v46 = vsel %vm393_vm15, %v405_v50, %v386_v31  ;;  %v413_v53 = vsel %vm393_vm15, %v409_v51, %v387_v32 }
  0x8e   :  { %v505_v61 = vrot.slane %v1506_v35, %v1381_v13  ;;  %v509_v3 = vrot.slane %v216_v37, %v1381_v13  ;;  %v513_v4 = vrot.slane %v217_v38, %v1381_v13  ;;  %v436_v7 = vsel %vm419_vm14, %v423_v55, %v410_v42 }
  0x8f   :  { %v470_v5 = vpop.permute.xlu1 %469  ;;  %v437_v10 = vsel %vm419_vm14, %v427_v56, %v411_v45  ;;  %v444_v18 = vpop.permute.xlu0 %443  ;;  %v128_v11 = vshll.u32 %v126_v41, 15  ;;  %v129_v47 = vshrl.u32 %v126_v41, 17  ;;  %v438_v49 = vsel %vm419_vm14, %v431_v57, %v412_v46 }
  0x90   :  { %vm471_vm0 = vcmp.eq.s32.totalorder %v470_v5, 1  ;;  %v439_v50 = vsel %vm419_vm14, %v435_v59, %v413_v53  ;;  %vm445_vm1 = vcmp.eq.s32.totalorder %v444_v18, 1  ;;  %v527_v22 = vrot.slane %v214_v52, %v1394_v8 }
  0x91   :  { %v462_v51 = vsel %vm445_vm1, %v449_v60, %v436_v7  ;;  %v463_v12 = vsel %vm445_vm1, %v453_v62, %v437_v10  ;;  %v464_v20 = vsel %vm445_vm1, %v457_v63, %v438_v49  ;;  %v465_v21 = vsel %vm445_vm1, %v461_v0, %v439_v50 }
  0x92   :  { %v535_v27 = vrot.slane %v216_v37, %v1394_v8  ;;  %v539_v55 = vrot.slane %v217_v38, %v1394_v8  ;;  %v127_v56 = vadd.s32 %v126_v41, %v122_v14  ;;  %v488_v57 = vsel %vm471_vm0, %v475_v1, %v462_v51 }
  0x93   :  { %v522_v36 = vpop.permute.xlu1 %521  ;;  %v489_v59 = vsel %vm471_vm0, %v479_v2, %v463_v12  ;;  %v496_v60 = vpop.permute.xlu0 %495  ;;  %v130_v62 = vor.u32 %v129_v47, %v128_v11  ;;  %v531_v63 = vrot.slane %v1506_v35, %v1394_v8  ;;  %v1662_v0 = vrot.slane %v1399_v17, %v1457_v48 }
  0x94   :  { %vm523_vm2 = vcmp.eq.s32.totalorder %v522_v36, 1  ;;  %v491_v15 = vsel %vm471_vm0, %v487_v39, %v465_v21  ;;  %vm497_vm3 = vcmp.eq.s32.totalorder %v496_v60, 1  ;;  %vm941_vm11 = vcmask 785408  }
  0x95   :  { %v490_v14 = vsel %vm471_vm0, %v1662_v0, %v464_v20  ;;  %v514_v1 = vsel %vm497_vm3, %v501_v58, %v488_v57  ;;  %v515_v44 = vsel %vm497_vm3, %v505_v61, %v489_v59  ;;  %v517_v16 = vsel %vm497_vm3, %v513_v4, %v491_v15 }
  0x96   :  { %v516_v24 = vsel %vm497_vm3, %v509_v3, %v490_v14  ;;  %v1544_v2 = vsel %vm523_vm2, %v527_v22, %v514_v1  ;;  %v1550_v28 = vsel %vm523_vm2, %v539_v55, %v517_v16  ;;  %v131_v52 = vxor.u32 %v130_v62, %v127_v56 }
  0x97   :  { %v1547_v25 = vsel %vm523_vm2, %v535_v27, %v516_v24  ;;  %v544_v17 = vrot.slane %v1544_v2, 4  ;;  %v562_v54 = vrot.slane %v1550_v28, 4  ;;  %v572_v30 = vmul.f32 %v1544_v2, %v1544_v2 }
  0x98   :  { %v556_v29 = vrot.slane %v1547_v25, 4  ;;  %v574_v31 = vmul.f32 %v1547_v25, %v1547_v25  ;;  %v575_v32 = vmul.f32 %v1550_v28, %v1550_v28  ;;  %v132_v33 = vadd.s32 %v131_v52, %v127_v56 }
  0x99   :  { %v133_v35 = vshll.u32 %v131_v52, 26  ;;  %v545_v37 = vadd.f32 %v544_v17, %v1544_v2  ;;  %v563_v39 = vadd.f32 %v562_v54, %v1550_v28  ;;  %v576_v41 = vrot.slane %v572_v30, 4 }
  0x9a   :  { %v557_v38 = vadd.f32 %v556_v29, %v1547_v25  ;;  %v588_v42 = vrot.slane %v574_v31, 4  ;;  %v594_v45 = vrot.slane %v575_v32, 4  ;;  %v134_v46 = vshrl.u32 %v131_v52, 6 }
  0x9b   :  { %v1565_v53 = vsel %vm523_vm2, %v531_v63, %v515_v44  ;;  %v546_v58 = vrot.slane %v545_v37, 2  ;;  %v564_v3 = vrot.slane %v563_v39, 2  ;;  %v577_v4 = vadd.f32 %v576_v41, %v572_v30 }
  0x9c   :  { %v558_v61 = vrot.slane %v557_v38, 2  ;;  %v589_v5 = vadd.f32 %v588_v42, %v574_v31  ;;  %v595_v7 = vadd.f32 %v594_v45, %v575_v32  ;;  %v135_v10 = vor.u32 %v134_v46, %v133_v35 }
  0x9d   :  { %v550_v18 = vrot.slane %v1565_v53, 4  ;;  %v547_v11 = vadd.f32 %v546_v58, %v545_v37  ;;  %v565_v49 = vadd.f32 %v564_v3, %v563_v39  ;;  %v578_v50 = vrot.slane %v577_v4, 2 }
  0x9e   :  { %v559_v47 = vadd.f32 %v558_v61, %v557_v38  ;;  %v590_v51 = vrot.slane %v589_v5, 2  ;;  %v596_v12 = vrot.slane %v595_v7, 2  ;;  %v136_v20 = vxor.u32 %v135_v10, %v132_v33 }
  0x9f   :  { %v551_v21 = vadd.f32 %v550_v18, %v1565_v53  ;;  %v548_v22 = vrot.slane %v547_v11, 1  ;;  %v566_v55 = vrot.slane %v565_v49, 1  ;;  %v579_v56 = vadd.f32 %v578_v50, %v577_v4 }
  0xa0   :  { %v560_v27 = vrot.slane %v559_v47, 1  ;;  %v591_v36 = vadd.f32 %v590_v51, %v589_v5  ;;  %v597_v57 = vadd.f32 %v596_v12, %v595_v7  ;;  %v138_v59 = vshll.u32 %v136_v20, 6 }
  0xa1   :  { %v549_v60 = vadd.f32 %v548_v22, %v547_v11  ;;  %v567_v63 = vadd.f32 %v566_v55, %v565_v49  ;;  %v580_v0 = vrot.slane %v579_v56, 1  ;;  %v137_v1 = vadd.s32 %v136_v20, %v132_v33 }
  0xa2   :  { %v561_v62 = vadd.f32 %v560_v27, %v559_v47  ;;  %v592_v14 = vrot.slane %v591_v36, 1  ;;  %v598_v15 = vrot.slane %v597_v57, 1  ;;  %v139_v44 = vshrl.u32 %v136_v20, 26 }
  0xa3   :  { %v1571_v16 = vmul.f32 0.125, %v567_v63  ;;  %v552_v52 = vrot.slane %v551_v21, 2  ;;  %v581_v17 = vadd.f32 %v580_v0, %v579_v56  ;;  %v1577_v37 = vmul.f32 0.125, %v549_v60 }
  0xa4   :  { %v1569_v24 = vmul.f32 0.125, %v561_v62  ;;  %v593_v29 = vadd.f32 %v592_v14, %v591_v36  ;;  %v599_v54 = vadd.f32 %v598_v15, %v597_v57  ;;  %v140_v30 = vor.u32 %v139_v44, %v138_v59 }
  0xa5   :  { %v607_v32 = vmul.f32 %v1571_v16, %v1571_v16  ;;  %v553_v35 = vadd.f32 %v552_v52, %v551_v21  ;;  %v573_v41 = vmul.f32 %v1565_v53, %v1565_v53  ;;  %v142_v45 = vadd.s32 %v137_v1, %v1177_v34 }
  0xa6   :  { %v606_v31 = vmul.f32 %v1569_v24, %v1569_v24  ;;  %v602_v33 = vmul.f32 0.125, %v593_v29  ;;  %v603_v38 = vmul.f32 0.125, %v599_v54  ;;  %v141_v39 = vxor.u32 %v140_v30, %v137_v1 }
  0xa7   :  { %v554_v42 = vrot.slane %v553_v35, 1  ;;  %v582_v58 = vrot.slane %v573_v41, 4  ;;  %v600_v61 = vmul.f32 0.125, %v581_v17  ;;  %v604_v4 = vmul.f32 %v1577_v37, %v1577_v37 }
  0xa8   :  { %v143_v46 = vadd.s32 %v141_v39, %v1171_v9  ;;  %v610_v3 = vsub.f32 %v602_v33, %v606_v31  ;;  %v611_v5 = vsub.f32 %v603_v38, %v607_v32  ;;  %v1118_v52 = vmov 1983009808  }
  0xa9   :  { %v555_v10 = vadd.f32 %v554_v42, %v553_v35  ;;  %v583_v18 = vadd.f32 %v582_v58, %v573_v41  ;;  %v608_v50 = vsub.f32 %v600_v61, %v604_v4  ;;  %v631_v17 = vunpack.c.l.s4 %v1118_v52  ;;  %v218_v4 = vld [vmem:[%s1659_s3] sm:$0xff]  ;;  %s1128_s3 = smov 32  }
  0xaa   :  { %v144_v7 = vadd.s32 5, %v143_v46  ;;  %v614_v49 = vmax.f32 %v610_v3, 0.0  ;;  %v615_v51 = vmax.f32 %v611_v5, 0.0 }
  0xab   :  { %v584_v47 = vrot.slane %v583_v18, 2  ;;  %v569_v12 = vmul.f32 0.125, %v555_v10  ;;  %v612_v27 = vmax.f32 %v608_v50, 0.0  ;;  %v632_v31 = vunpack.c.0.s8 %v631_v17 }
  0xac   :  { %v145_v11 = vxor.u32 %v144_v7, %v142_v45  ;;  %v618_v22 = vadd.f32 1e-05, %v614_v49  ;;  %v619_v55 = vadd.f32 1e-05, %v615_v51 }
  0xad   :  { %v585_v34 = vadd.f32 %v584_v47, %v583_v18  ;;  %v605_v57 = vmul.f32 %v569_v12, %v569_v12  ;;  %v616_v0 = vadd.f32 1e-05, %v612_v27  ;;  %v635_v39 = vsub.s32 %v632_v31, %v1378_v6 }
  0xae   :  { %146 = set.rngseed %v145_v11  ;;  %1101 = vrsqrt.f32 %v618_v22 }
  0xaf   :  { %v147_v20 = vrng  ;;  %v586_v21 = vrot.slane %v585_v34, 1  ;;  %1103 = vrsqrt.f32 %v619_v55 }
  0xb0   :  { %v148_v9 = vshrl.u32 %v147_v20, 9  ;;  %1105 = vrsqrt.f32 %v616_v0 }
  0xb1   :  { %v587_v36 = vadd.f32 %v586_v21, %v585_v34 }
  0xb2   :  { %v149_v56 = vor.u32 1065353216, %v148_v9 }
  0xb3   :  { %v601_v60 = vmul.f32 0.125, %v587_v36 }
  0xb4   :  { %v948_v59 = vadd.f32 -1.0, %v149_v56 }
  0xb5   :  { %v609_v63 = vsub.f32 %v601_v60, %v605_v57 }
  0xb6   :  { %v152_v62 = vmul.f32 2.0, %v948_v59 }
  0xb7   :  { %v613_v15 = vmax.f32 %v609_v63, 0.0 }
  0xb8   :  { %v153_v14 = vadd.f32 -0.99999994, %v152_v62  ;;  %v1102_v30 = vpop.eup %1101 }
  0xb9   :  { %v617_v44 = vadd.f32 1e-05, %v613_v15  ;;  %v1104_v32 = vpop.eup %1103 }
  0xba   :  { %v1585_v1 = vmax.f32 %v153_v14, -0.99999994  ;;  %v629_v38 = vcombine.low %v1102_v30, %v1104_v32  ;;  %v1106_v41 = vpop.eup %1105 }
  0xbb   :  { %1107 = vrsqrt.f32 %v617_v44 }
  0xbc   :  { %v155_v29 = vsub.f32 0.0, %v1585_v1  ;;  %v643_v58 = vrot.slane %v629_v38, %v635_v39  ;;  %v1119_v38 = vmov -0.00020021426  }
  0xbe   :  { %v156_v54 = vmul.f32 %v155_v29, %v1585_v1 }
  0xc0   :  { %v157_v35 = vadd.f32 1.0, %v156_v54  ;;  %v160_v33 = vmul.f32 -0.5, %v156_v54  ;;  %v163_v61 = vand.u32 2147483647, %v156_v54 }
  0xc2   :  { %1109 = vlog2.f32 %v157_v35  ;;  %v161_v45 = vadd.f32 1.0, %v160_v33  ;;  %vm164_vm4 = vcmp.lt.f32.partialorder %v163_v61, 0.0004427343  ;;  %v1121_v61 = vmov 0.0013493432  }
  0xc4   :  { %v162_v5 = vmul.f32 %v161_v45, %v156_v54 }
  0xc5   :  { %v1108_v42 = vpop.eup %1107 }
  0xc6   :  { %v628_v46 = vcombine.low %v1106_v41, %v1108_v42  ;;  %v1120_v42 = vmov 0.00010095056  }
  0xc8   :  { %v636_v3 = vrot.slane %v628_v46, %v635_v39 }
  0xca   :  { %v644_v7 = vcombine.low %v636_v3, %v643_v58 }
  0xcc   :  { %v1110_v10 = vpop.eup %1109  ;;  %v646_v11 = vmul.f32 %v644_v7, %v218_v4  ;;  %v1122_v7 = vmov -0.0036734284  }
  0xcd   :  { %v159_v18 = vmul.f32 0.6931472, %v1110_v10 }
  0xce   :  { %v651_v6 = vrot.slane %v646_v11, %v1381_v13  ;;  %v655_v49 = vrot.slane %v646_v11, %v1407_v19  ;;  %v659_v50 = vrot.slane %v646_v11, %v1417_v26  ;;  %v663_v51 = vrot.slane %v646_v11, %v1447_v43 }
  0xcf   :  { %v165_v47 = vsel %vm164_vm4, %v162_v5, %v159_v18 }
  0xd0   :  { %v1597_v34 = vsub.f32 0.0, %v165_v47  ;;  %v668_v20 = vmul.f32 %v651_v6, %v1577_v37  ;;  %v669_v9 = vmul.f32 %v655_v49, %v569_v12  ;;  %v670_v21 = vmul.f32 %v659_v50, %v1569_v24 }
  0xd1   :  { %v671_v22 = vmul.f32 %v663_v51, %v1571_v16  ;;  %v703_v26 = vrot.slane %v655_v49, %v1381_v13  ;;  %v711_v43 = vrot.slane %v663_v51, %v1381_v13  ;;  %v699_v59 = vrot.slane %v651_v6, %v1381_v13 }
  0xd2   :  { %v676_v27 = vcombine.low %v668_v20, %v669_v9  ;;  %1111 = vrsqrt.f32 %v1597_v34  ;;  %v707_v37 = vrot.slane %v659_v50, %v1381_v13  ;;  %vm171_vm5 = vcmp.eq.f32.partialorder %v1597_v34, inf }
  0xd3   :  { %v677_v55 = vcombine.low %v670_v21, %v671_v22  ;;  %v713_v24 = vmul.f32 %v703_v26, %v1565_v53  ;;  %v715_v14 = vmul.f32 %v711_v43, %v1550_v28  ;;  %v712_v15 = vmul.f32 %v699_v59, %v1544_v2 }
  0xd4   :  { %v684_v56 = vrot.slane %v676_v27, %v635_v39  ;;  %v714_v44 = vmul.f32 %v707_v37, %v1547_v25  ;;  %vm173_vm6 = vcmp.eq.f32.partialorder %v1597_v34, 0.0  ;;  %vm167_vm7 = vcmp.lt.f32.partialorder %v1597_v34, 5.0 }
  0xd5   :  { %v691_v36 = vrot.slane %v677_v55, %v635_v39  ;;  %v949_v29 = vadd.f32 -2.5, %v1597_v34  ;;  %v178_v39 = vsel %vm167_vm7, 2.8102264e-08, %v1119_v38  ;;  %v179_v45 = vsel %vm167_vm7, 3.4327394e-07, %v1120_v42 }
  0xd6   :  { %v182_v3 = vsel %vm167_vm7, -3.5233877e-06, %v1121_v61  ;;  %v185_v10 = vsel %vm167_vm7, -4.3915065e-06, %v1122_v7  ;;  %v1123_v47 = vmov 0.0057395077  }
  0xd7   :  { %v692_v19 = vcombine.low %v684_v56, %v691_v36  ;;  %v188_v6 = vsel %vm167_vm7, 0.00021858087, %v1123_v47  ;;  %v1124_v51 = vmov -0.0076224613   ;;  %v1125_v22 = vmov 0.0094388705  }
  0xd8   :  { %v191_v20 = vsel %vm167_vm7, -0.001253725, %v1124_v51  ;;  %v194_v27 = vsel %vm167_vm7, -0.0041776816, %v1125_v22  ;;  %v1126_v36 = vmov 1.001674  }
  0xd9   :  { %v693_v57 = vrot.slane %v692_v19, 7  ;;  %v197_v19 = vsel %vm167_vm7, 0.24664073, %v1126_v36  ;;  %v1127_v43 = vmov 2.8329768  }
  0xda   :  { %v200_v59 = vsel %vm167_vm7, 1.5014094, %v1127_v43  ;;  %v203_v37 = vand.u32 2147483647, %v1585_v1 }
  0xdb   :  { %v695_v12 = vsub.f32 %v218_v4, %v693_v57 }
  0xdc   :  { %v1112_v0 = vpop.eup %1111  ;;  %vm204_vm8 = vcmp.eq.f32.partialorder %v203_v37, 1.0 }
  0xdd   :  { %v724_v16 = vrot.slane %v695_v12, %v1410_v23  ;;  %v732_v60 = vrot.slane %v695_v12, %v1457_v48  ;;  %v720_v62 = vrot.slane %v695_v12, %v1394_v8  ;;  %v728_v63 = vrot.slane %v695_v12, %v1440_v40 }
  0xde   :  { %v170_v52 = vmul.f32 %v1112_v0, %v1597_v34  ;;  %v174_v40 = vand.u32 2147483648, %v1597_v34 }
  0xdf   :  { %v744_v13 = vrot.slane %v724_v16, %v1394_v8  ;;  %v752_v53 = vrot.slane %v732_v60, %v1394_v8  ;;  %v740_v23 = vrot.slane %v720_v62, %v1394_v8  ;;  %v748_v48 = vrot.slane %v728_v63, %v1394_v8 }
  0xe0   :  { %v172_v54 = vsel %vm171_vm5, %v1597_v34, %v170_v52  ;;  %v205_v16 = vmul.f32 inf, %v1585_v1  ;;  %v951_v34 = vld [vmem:[%s1660_s5] ss:$0 sm:$0xff] }
  0xe1   :  { %v754_v28 = vadd.f32 %v744_v13, %v713_v24  ;;  %v756_v2 = vadd.f32 %v752_v53, %v715_v14  ;;  %v753_v17 = vadd.f32 %v740_v23, %v712_v15  ;;  %v755_v25 = vadd.f32 %v748_v48, %v714_v44 }
  0xe2   :  { %v175_v35 = vsel %vm173_vm6, %v174_v40, %v172_v54 }
  0xe3   :  { %v758_v30 = vmax.f32 %v754_v28, 0.0  ;;  %v760_v31 = vmax.f32 %v756_v2, 0.0  ;;  %v757_v32 = vmax.f32 %v753_v17, 0.0  ;;  %v759_v8 = vmax.f32 %v755_v25, 0.0 }
  0xe4   :  { %v950_v33 = vadd.f32 -3.0, %v175_v35 }
  0xe5   :  { %831 = vmatprep.mubr.f32.mxu0 %v758_v30  ;;  %901 = vmatprep.mubr.f32.mxu1 %v760_v31 }
  0xe6   :  { %832 = vmatmul.mubr.f32.vlgmr.msra.gmra.mrb[0].mxu0 %v757_v32  ;;  %902 = vmatmul.mubr.f32.vlgmr.msra.gmra.mrb[0].mxu1 %v759_v8  ;;  %v177_v41 = vsel %vm167_vm7, %v949_v29, %v950_v33 }
  0xe7   :  { %v180_v46 = vmul.f32 %v178_v39, %v177_v41 }
  0xe9   :  { %v181_v58 = vadd.f32 %v180_v46, %v179_v45 }
  0xeb   :  { %v183_v4 = vmul.f32 %v181_v58, %v177_v41 }
  0xed   :  { %v184_v5 = vadd.f32 %v183_v4, %v182_v3 }
  0xef   :  { %v186_v18 = vmul.f32 %v184_v5, %v177_v41 }
  0xf1   :  { %v187_v11 = vadd.f32 %v186_v18, %v185_v10 }
  0xf3   :  { %v189_v49 = vmul.f32 %v187_v11, %v177_v41 }
  0xf5   :  { %v190_v50 = vadd.f32 %v189_v49, %v188_v6 }
  0xf7   :  { %v192_v9 = vmul.f32 %v190_v50, %v177_v41 }
  0xf9   :  { %v193_v21 = vadd.f32 %v192_v9, %v191_v20 }
  0xfb   :  { %v195_v55 = vmul.f32 %v193_v21, %v177_v41 }
  0xfd   :  { %v196_v56 = vadd.f32 %v195_v55, %v194_v27 }
  0xff   :  { %v198_v26 = vmul.f32 %v196_v56, %v177_v41 }
 0x101   :  { %v199_v57 = vadd.f32 %v198_v26, %v197_v19 }
 0x103   :  { %v201_v12 = vmul.f32 %v199_v57, %v177_v41 }
 0x105   :  { %v202_v24 = vadd.f32 %v201_v12, %v200_v59 }
 0x107   :  { %v206_v60 = vmul.f32 %v202_v24, %v1585_v1 }
 0x109   :  { %v207_v62 = vsel %vm204_vm8, %v205_v16, %v206_v60 }
 0x10a   :  { %v208_v63 = vmul.f32 1.4142135, %v207_v62 }
 0x10c   :  { %917 = vrot.lane.b32.xlu0 %v208_v63, %s1128_s3 }
 0x17e   :  { %v918_v30 = vpop.permute.xlu0 %917 }
 0x1b9   :  { %v984_v0 = vpop.f32.mrb[0].mxu0  ;;  %v1019_v14 = vpop.f32.mrb[0].mxu1 }
 0x1ba   :  { %v985_v15 = vpop.f32.mrb[1].mxu0  ;;  %v1020_v44 = vpop.f32.mrb[1].mxu1 }
 0x1bb   :  { %v986_v13 = vadd.f32 %v985_v15, %v984_v0  ;;  %v1021_v53 = vadd.f32 %v1020_v44, %v1019_v14 }
 0x1bd   :  { %v834_v23 = vadd.f32 %v986_v13, %v951_v34 }
 0x1bf   :  { %v904_v48 = vadd.f32 %v1021_v53, %v834_v23 }
 0x1c1   :  { %v908_v52 = vand.u32 2147483647, %v904_v48  ;;  %927 = vrot.lane.b32.xlu0 %v904_v48, %s1128_s3  ;;  %v907_v25 = vmax.f32 %v904_v48, 0.0 }
 0x1c3   :  { %v909_v40 = vsub.f32 0.0, %v908_v52 }
 0x1c5   :  { %v910_v1 = vmul.f32 1.442695, %v909_v40  ;;  %934 = vrot.lane.b32.xlu0 %v208_v63, %s1129_s15 }
 0x1c7   :  { %1113 = vpow2.f32 %v910_v1 }
 0x1d1   :  { %v1114_v28 = vpop.eup %1113 }
 0x1d2   :  { %v912_v2 = vadd.f32 1.0, %v1114_v28 }
 0x1d4   :  { %1115 = vlog2.f32 %v912_v2 }
 0x1de   :  { %v1116_v17 = vpop.eup %1115 }
 0x1df   :  { %v914_v29 = vmul.f32 0.6931472, %v1116_v17 }
 0x1e1   :  { %v915_v54 = vadd.f32 %v914_v29, %v907_v25 }
 0x1e3   :  { %v920_v31 = vmul.f32 %v918_v30, %v915_v54 }
 0x1e5   :  { %922 = vrot.lane.b32.xlu1 %v920_v31, %s1129_s15 }
 0x1e9   :  { %931 = vrot.lane.b32.xlu1 %v915_v54, %s1128_s3 }
 0x233   :  { %v928_v32 = vpop.permute.xlu0 %927 }
 0x237   :  { %v935_v39 = vpop.permute.xlu0 %934 }
 0x257   :  { %v923_v8 = vpop.permute.xlu1 %922 }
 0x258   :  { %v925_v35 = vadd.f32 %v923_v8, %v904_v48 }
 0x25a   :  { %v938_v33 = vsel %vm937_vm9, %v925_v35, %v928_v32 }
 0x25b   :  { %v932_v38 = vpop.permute.xlu1 %931 }
 0x25c   :  { %v940_v41 = vsel %vm939_vm10, %v938_v33, %v932_v38 }
 0x25d   :  { %v942_v42 = vsel %vm941_vm11, %v940_v41, %v935_v39 }
 0x25e   :  { %943 = vst [vmem:[%s1661_s6] sm:$0xff] %v942_v42 }

// kernel: prob_generator_forward.1
= control target key start
LH: loop header
LB: loop body
LE: loop exit
PB: predicated region body
PF: predicated region fallthrough
CT: control target
= control target key end

     0   :  { %v916_v0 = vmov 0   ;;  %s917_s27 = smov 32   ;;  %s919_s20 = smov 96   ;;  %s1360_s0 = inlined_call_operand.vmem [shape: s32[8,1], index: 0, kind: input, shape index: {}]   ;;  %s1361_s3 = inlined_call_operand.vmem [shape: f32[512,64], index: 3, kind: input, shape index: {}]   ;;  %s1362_s5 = inlined_call_operand.vmem [shape: f32[8,32], index: 5, kind: input, shape index: {}]   ;;  %s1363_s1 = inlined_call_operand.vmem [shape: f32[10,512], index: 1, kind: input, shape index: {}]   ;;  %s1364_s2 = inlined_call_operand.vmem [shape: f32[2,512], index: 2, kind: input, shape index: {}]   ;;  %s1365_s4 = inlined_call_operand.vmem [shape: f32[1,64], index: 4, kind: input, shape index: {}]   ;;  %s1366_s6 = inlined_call_operand.vmem [shape: f32[8,128], index: 6, kind: output, shape index: {}]  }
   0x1   :  { %903 = vset.pattern.permute.xlu1 %v916_v0  ;;  %902 = vset.pattern.permute.xlu0 %v916_v0  ;;  %v23_v1 = vld [vmem:[%s1360_s0] sm:$0xff]  ;;  %v50_v13 = vld [vmem:[%s1361_s3 + $0x88] sm:$0xff]  ;;  %v51_v23 = vld [vmem:[%s1361_s3 + $0x90] sm:$0xff] }
   0x2   :  { %vm151_vm0 = vcmp.eq.s32.totalorder %v23_v1, 2  ;;  %vm99_vm1 = vcmp.eq.s32.totalorder %v23_v1, 0  ;;  %vm177_vm2 = vcmp.eq.s32.totalorder %v23_v1, 3  ;;  %vm125_vm3 = vcmp.eq.s32.totalorder %v23_v1, 1  ;;  %v49_v12 = vld [vmem:[%s1361_s3 + $0x80] sm:$0xff]  ;;  %v82_v16 = vld [vmem:[%s1361_s3 + $0x188] sm:$0xff] }
   0x3   :  { %v152_v2 = vsel %vm151_vm0, 1, %v916_v0  ;;  %v100_v3 = vsel %vm99_vm1, 1, %v916_v0  ;;  %v178_v4 = vsel %vm177_vm2, 1, %v916_v0  ;;  %v126_v5 = vsel %vm125_vm3, 1, %v916_v0  ;;  %v81_v14 = vld [vmem:[%s1361_s3 + $0x180] sm:$0xff]  ;;  %v34_v18 = vld [vmem:[%s1361_s3 + $0x8] sm:$0xff] }
   0x4   :  { %154 = vperm.xlu1 %903, %v152_v2   ;;  %102 = vperm.xlu0 %902, %v100_v3   ;;  %vm229_vm4 = vcmp.eq.s32.totalorder %v23_v1, 5  ;;  %vm203_vm5 = vcmp.eq.s32.totalorder %v23_v1, 4  ;;  %vm281_vm6 = vcmp.eq.s32.totalorder %v23_v1, 7  ;;  %vm255_vm7 = vcmp.eq.s32.totalorder %v23_v1, 6  ;;  %v33_v17 = vld [vmem:[%s1361_s3] sm:$0xff]  ;;  %v66_v22 = vld [vmem:[%s1361_s3 + $0x108] sm:$0xff] }
   0x5   :  { %v230_v6 = vsel %vm229_vm4, 1, %v916_v0  ;;  %v204_v7 = vsel %vm203_vm5, 1, %v916_v0  ;;  %v282_v8 = vsel %vm281_vm6, 1, %v916_v0  ;;  %v256_v9 = vsel %vm255_vm7, 1, %v916_v0  ;;  %v65_v21 = vld [vmem:[%s1361_s3 + $0x100] sm:$0xff]  ;;  %v52_v25 = vld [vmem:[%s1361_s3 + $0x98] sm:$0xff] }
   0x6   :  { %vm333_vm8 = vcmp.eq.s32.totalorder %v23_v1, 9  ;;  %vm307_vm9 = vcmp.eq.s32.totalorder %v23_v1, 8  ;;  %v834_v15 = vpack.c.bf16 %v50_v13, %v49_v12  ;;  %v866_v19 = vpack.c.bf16 %v82_v16, %v81_v14  ;;  %v83_v26 = vld [vmem:[%s1361_s3 + $0x190] sm:$0xff]  ;;  %v84_v27 = vld [vmem:[%s1361_s3 + $0x198] sm:$0xff]  ;;  %v53_v35 = vld [vmem:[%s1361_s3 + $0xa0] sm:$0xff] }
   0x7   :  { %v334_v10 = vsel %vm333_vm8, 1, %v916_v0  ;;  %v308_v11 = vsel %vm307_vm9, 1, %v916_v0  ;;  %v836_v20 = vpack.c.bf16 %v34_v18, %v33_v17  ;;  %v868_v24 = vpack.c.bf16 %v66_v22, %v65_v21  ;;  %v35_v30 = vld [vmem:[%s1361_s3 + $0x10] sm:$0xff]  ;;  %v36_v31 = vld [vmem:[%s1361_s3 + $0x18] sm:$0xff]  ;;  %v54_v36 = vld [vmem:[%s1361_s3 + $0xa8] sm:$0xff] }
   0x8   :  { %180 = vperm.xlu1 %903, %v178_v4   ;;  %128 = vperm.xlu0 %902, %v126_v5   ;;  %v838_v28 = vpack.c.bf16 %v52_v25, %v51_v23  ;;  %v870_v29 = vpack.c.bf16 %v84_v27, %v83_v26  ;;  %v67_v32 = vld [vmem:[%s1361_s3 + $0x110] sm:$0xff]  ;;  %v840_v33 = vpack.c.bf16 %v36_v31, %v35_v30  ;;  %v68_v34 = vld [vmem:[%s1361_s3 + $0x118] sm:$0xff]  ;;  %v85_v39 = vld [vmem:[%s1361_s3 + $0x1a0] sm:$0xff]  ;;  %vm752_vm4 = vcmask 261120  }
   0x9   :  { %835 = vmatprep.subr.bf16.mxu0 %v834_v15  ;;  %867 = vmatprep.subr.bf16.mxu1 %v866_v19  ;;  %v872_v37 = vpack.c.bf16 %v68_v34, %v67_v32  ;;  %v842_v38 = vpack.c.bf16 %v54_v36, %v53_v35  ;;  %v86_v40 = vld [vmem:[%s1361_s3 + $0x1a8] sm:$0xff]  ;;  %v37_v41 = vld [vmem:[%s1361_s3 + $0x20] sm:$0xff]  ;;  %v55_v47 = vld [vmem:[%s1361_s3 + $0xb0] sm:$0xff]  ;;  %vm754_vm5 = vcmask 523264   ;;  %vm756_vm6 = vcmask 785408  }
   0xa   :  { %837 = vmatpush3.bf16.msra.mxu0 %v836_v20  ;;  %869 = vmatpush3.bf16.msra.mxu1 %v868_v24  ;;  %v874_v42 = vpack.c.bf16 %v86_v40, %v85_v39  ;;  %v38_v43 = vld [vmem:[%s1361_s3 + $0x28] sm:$0xff]  ;;  %v69_v44 = vld [vmem:[%s1361_s3 + $0x120] sm:$0xff]  ;;  %v56_v48 = vld [vmem:[%s1361_s3 + $0xb8] sm:$0xff] }
   0xb   :  { %839 = vmatprep.subr.bf16.mxu0 %v838_v28  ;;  %871 = vmatprep.subr.bf16.mxu1 %v870_v29  ;;  %v70_v45 = vld [vmem:[%s1361_s3 + $0x128] sm:$0xff]  ;;  %v844_v46 = vpack.c.bf16 %v38_v43, %v37_v41  ;;  %v87_v49 = vld [vmem:[%s1361_s3 + $0x1b0] sm:$0xff]  ;;  %v846_v51 = vpack.c.bf16 %v56_v48, %v55_v47  ;;  %v88_v52 = vld [vmem:[%s1361_s3 + $0x1b8] sm:$0xff] }
   0xc   :  { %232 = vperm.xlu1 %903, %v230_v6   ;;  %206 = vperm.xlu0 %902, %v204_v7   ;;  %v876_v50 = vpack.c.bf16 %v70_v45, %v69_v44  ;;  %v39_v53 = vld [vmem:[%s1361_s3 + $0x30] sm:$0xff]  ;;  %v40_v54 = vld [vmem:[%s1361_s3 + $0x38] sm:$0xff]  ;;  %v878_v55 = vpack.c.bf16 %v88_v52, %v87_v49  ;;  %v57_v58 = vld [vmem:[%s1361_s3 + $0xc0] sm:$0xff]  ;;  %v105_v45 = vlaneseq }
   0xd   :  { %v71_v56 = vld [vmem:[%s1361_s3 + $0x130] sm:$0xff]  ;;  %v72_v57 = vld [vmem:[%s1361_s3 + $0x138] sm:$0xff]  ;;  %v58_v59 = vld [vmem:[%s1361_s3 + $0xc8] sm:$0xff]  ;;  %v848_v62 = vpack.c.bf16 %v40_v54, %v39_v53 }
   0xe   :  { %841 = vmatpush3.bf16.msra.mxu0 %v840_v33  ;;  %873 = vmatpush3.bf16.msra.mxu1 %v872_v37  ;;  %v89_v60 = vld [vmem:[%s1361_s3 + $0x1c0] sm:$0xff]  ;;  %v90_v61 = vld [vmem:[%s1361_s3 + $0x1c8] sm:$0xff]  ;;  %v880_v63 = vpack.c.bf16 %v72_v57, %v71_v56  ;;  %v850_v0 = vpack.c.bf16 %v58_v59, %v57_v58  ;;  %v59_v6 = vld [vmem:[%s1361_s3 + $0xd0] sm:$0xff] }
   0xf   :  { %843 = vmatprep.subr.bf16.mxu0 %v842_v38  ;;  %875 = vmatprep.subr.bf16.mxu1 %v874_v42  ;;  %v41_v1 = vld [vmem:[%s1361_s3 + $0x40] sm:$0xff]  ;;  %v42_v2 = vld [vmem:[%s1361_s3 + $0x48] sm:$0xff]  ;;  %v882_v4 = vpack.c.bf16 %v90_v61, %v89_v60  ;;  %v60_v7 = vld [vmem:[%s1361_s3 + $0xd8] sm:$0xff] }
  0x10   :  { %284 = vperm.xlu1 %903, %v282_v8   ;;  %258 = vperm.xlu0 %902, %v256_v9   ;;  %v73_v3 = vld [vmem:[%s1361_s3 + $0x140] sm:$0xff]  ;;  %v74_v5 = vld [vmem:[%s1361_s3 + $0x148] sm:$0xff]  ;;  %v91_v8 = vld [vmem:[%s1361_s3 + $0x1d0] sm:$0xff]  ;;  %v854_v12 = vpack.c.bf16 %v60_v7, %v59_v6 }
  0x11   :  { %v92_v9 = vld [vmem:[%s1361_s3 + $0x1d8] sm:$0xff]  ;;  %v43_v13 = vld [vmem:[%s1361_s3 + $0x50] sm:$0xff]  ;;  %v61_v18 = vld [vmem:[%s1361_s3 + $0xe0] sm:$0xff] }
  0x12   :  { %845 = vmatpush3.bf16.msra.mxu0 %v844_v46  ;;  %877 = vmatpush3.bf16.msra.mxu1 %v876_v50  ;;  %v44_v14 = vld [vmem:[%s1361_s3 + $0x58] sm:$0xff]  ;;  %v75_v15 = vld [vmem:[%s1361_s3 + $0x150] sm:$0xff]  ;;  %v886_v16 = vpack.c.bf16 %v92_v9, %v91_v8  ;;  %v62_v19 = vld [vmem:[%s1361_s3 + $0xe8] sm:$0xff]  ;;  %v1157_v46 = vshrl.u32 %v105_v45, 7 }
  0x13   :  { %847 = vmatprep.subr.bf16.mxu0 %v846_v51  ;;  %879 = vmatprep.subr.bf16.mxu1 %v878_v55  ;;  %v76_v17 = vld [vmem:[%s1361_s3 + $0x158] sm:$0xff]  ;;  %v93_v20 = vld [vmem:[%s1361_s3 + $0x1e0] sm:$0xff]  ;;  %v94_v21 = vld [vmem:[%s1361_s3 + $0x1e8] sm:$0xff]  ;;  %v856_v22 = vpack.c.bf16 %v44_v14, %v43_v13  ;;  %v858_v24 = vpack.c.bf16 %v62_v19, %v61_v18 }
  0x14   :  { %336 = vperm.xlu1 %903, %v334_v10   ;;  %310 = vperm.xlu0 %902, %v308_v11   ;;  %v852_v10 = vpack.c.bf16 %v42_v2, %v41_v1  ;;  %v884_v11 = vpack.c.bf16 %v74_v5, %v73_v3  ;;  %v888_v23 = vpack.c.bf16 %v76_v17, %v75_v15  ;;  %v45_v25 = vld [vmem:[%s1361_s3 + $0x60] sm:$0xff]  ;;  %v46_v26 = vld [vmem:[%s1361_s3 + $0x68] sm:$0xff]  ;;  %v63_v30 = vld [vmem:[%s1361_s3 + $0xf0] sm:$0xff]  ;;  %v1160_v47 = vsub.s32 0, %v1157_v46 }
  0x15   :  { %v77_v27 = vld [vmem:[%s1361_s3 + $0x160] sm:$0xff]  ;;  %v890_v28 = vpack.c.bf16 %v94_v21, %v93_v20  ;;  %v78_v29 = vld [vmem:[%s1361_s3 + $0x168] sm:$0xff]  ;;  %v64_v31 = vld [vmem:[%s1361_s3 + $0xf8] sm:$0xff]  ;;  %v860_v34 = vpack.c.bf16 %v46_v26, %v45_v25  ;;  %v1178_v51 = vsub.s32 1, %v1157_v46  ;;  %v1186_v53 = vsub.s32 2, %v1157_v46 }
  0x16   :  { %849 = vmatpush3.bf16.msra.mxu0 %v848_v62  ;;  %881 = vmatpush3.bf16.msra.mxu1 %v880_v63  ;;  %v95_v32 = vld [vmem:[%s1361_s3 + $0x1f0] sm:$0xff]  ;;  %v96_v33 = vld [vmem:[%s1361_s3 + $0x1f8] sm:$0xff]  ;;  %v892_v35 = vpack.c.bf16 %v78_v29, %v77_v27  ;;  %v862_v36 = vpack.c.bf16 %v64_v31, %v63_v30  ;;  %v1153_v44 = vld [vmem:[%s1362_s5] sm:$0xff]  ;;  %v1189_v54 = vsub.s32 3, %v1157_v46  ;;  %v1198_v58 = vsub.s32 4, %v1157_v46 }
  0x17   :  { %851 = vmatprep.subr.bf16.mxu0 %v850_v0  ;;  %883 = vmatprep.subr.bf16.mxu1 %v882_v4  ;;  %v47_v37 = vld [vmem:[%s1361_s3 + $0x70] sm:$0xff]  ;;  %v48_v38 = vld [vmem:[%s1361_s3 + $0x78] sm:$0xff]  ;;  %v894_v39 = vpack.c.bf16 %v96_v33, %v95_v32  ;;  %v1165_v48 = vld [vmem:[%s1363_s1] sm:$0xff]  ;;  %v1215_v2 = vsub.s32 5, %v1157_v46  ;;  %v1224_v6 = vsub.s32 6, %v1157_v46 }
  0x18   :  { %v79_v40 = vld [vmem:[%s1361_s3 + $0x170] sm:$0xff]  ;;  %v80_v41 = vld [vmem:[%s1361_s3 + $0x178] sm:$0xff]  ;;  %v864_v42 = vpack.c.bf16 %v48_v38, %v47_v37  ;;  %732 = vrot.lane.b32.xlu0 %v1153_v44, %s917_s27  ;;  %v1170_v49 = vld [vmem:[%s1363_s1 + $0x8] sm:$0xff]  ;;  %v108_v55 = vrot.slane %v1165_v48, %v1160_v47  ;;  %v134_v60 = vrot.slane %v1165_v48, %v1178_v51  ;;  %v160_v0 = vrot.slane %v1165_v48, %v1186_v53 }
  0x19   :  { %v896_v43 = vpack.c.bf16 %v80_v41, %v79_v40  ;;  %v1175_v50 = vld [vmem:[%s1363_s1 + $0x10] sm:$0xff]  ;;  %v1183_v52 = vld [vmem:[%s1363_s1 + $0x18] sm:$0xff]  ;;  %v112_v56 = vrot.slane %v1170_v49, %v1160_v47  ;;  %v138_v61 = vrot.slane %v1170_v49, %v1178_v51  ;;  %v164_v1 = vrot.slane %v1170_v49, %v1186_v53 }
  0x1a   :  { %853 = vmatpush3.bf16.msra.mxu0 %v852_v10  ;;  %885 = vmatpush3.bf16.msra.mxu1 %v884_v11  ;;  %v116_v57 = vrot.slane %v1175_v50, %v1160_v47  ;;  %v120_v59 = vrot.slane %v1183_v52, %v1160_v47  ;;  %v142_v62 = vrot.slane %v1175_v50, %v1178_v51 }
  0x1b   :  { %855 = vmatprep.subr.bf16.mxu0 %v854_v12  ;;  %887 = vmatprep.subr.bf16.mxu1 %v886_v16  ;;  %v146_v63 = vrot.slane %v1183_v52, %v1178_v51  ;;  %v168_v3 = vrot.slane %v1175_v50, %v1186_v53  ;;  %v172_v4 = vrot.slane %v1183_v52, %v1186_v53 }
  0x1c   :  { %v186_v5 = vrot.slane %v1165_v48, %v1189_v54  ;;  %v190_v9 = vrot.slane %v1170_v49, %v1189_v54  ;;  %v194_v10 = vrot.slane %v1175_v50, %v1189_v54  ;;  %v198_v11 = vrot.slane %v1183_v52, %v1189_v54 }
  0x1d   :  { %v212_v12 = vrot.slane %v1165_v48, %v1198_v58  ;;  %v216_v13 = vrot.slane %v1170_v49, %v1198_v58  ;;  %v220_v14 = vrot.slane %v1175_v50, %v1198_v58  ;;  %v224_v15 = vrot.slane %v1183_v52, %v1198_v58 }
  0x1e   :  { %857 = vmatpush3.bf16.msra.mxu0 %v856_v22  ;;  %889 = vmatpush3.bf16.msra.mxu1 %v888_v23  ;;  %v238_v16 = vrot.slane %v1165_v48, %v1215_v2  ;;  %v242_v17 = vrot.slane %v1170_v49, %v1215_v2  ;;  %v246_v18 = vrot.slane %v1175_v50, %v1215_v2  ;;  %v1255_v23 = vsub.s32 7, %v1157_v46 }
  0x1f   :  { %859 = vmatprep.subr.bf16.mxu0 %v858_v24  ;;  %891 = vmatprep.subr.bf16.mxu1 %v890_v28  ;;  %v250_v19 = vrot.slane %v1183_v52, %v1215_v2  ;;  %v264_v20 = vrot.slane %v1165_v48, %v1224_v6  ;;  %v268_v21 = vrot.slane %v1170_v49, %v1224_v6 }
  0x20   :  { %v272_v22 = vrot.slane %v1175_v50, %v1224_v6  ;;  %v276_v28 = vrot.slane %v1183_v52, %v1224_v6 }
  0x22   :  { %861 = vmatpush3.bf16.msra.mxu0 %v860_v34  ;;  %893 = vmatpush3.bf16.msra.mxu1 %v892_v35 }
  0x23   :  { %863 = vmatprep.subr.bf16.mxu0 %v862_v36  ;;  %895 = vmatprep.subr.bf16.mxu1 %v894_v39 }
  0x26   :  { %865 = vmatpush3.bf16.msra.mxu0 %v864_v42  ;;  %897 = vmatpush3.bf16.msra.mxu1 %v896_v43 }
  0x83   :  { %v155_v7 = vpop.permute.xlu1 %154  ;;  %v103_v8 = vpop.permute.xlu0 %102 }
  0x84   :  { %vm104_vm10 = vcmp.eq.s32.totalorder %v103_v8, 1  ;;  %vm156_vm11 = vcmp.eq.s32.totalorder %v155_v7, 1 }
  0x85   :  { %v121_v24 = vsel %vm104_vm10, %v108_v55, 0.0  ;;  %v122_v25 = vsel %vm104_vm10, %v112_v56, 0.0  ;;  %v123_v29 = vsel %vm104_vm10, %v116_v57, 0.0  ;;  %v124_v30 = vsel %vm104_vm10, %v120_v59, 0.0  ;;  %v28_v55 = vld [vmem:[%s1363_s1 + $0x20] sm:$0x3] }
  0x86   :  { %v29_v56 = vld [vmem:[%s1363_s1 + $0x28] sm:$0x3]  ;;  %v30_v57 = vld [vmem:[%s1363_s1 + $0x30] sm:$0x3]  ;;  %v31_v59 = vld [vmem:[%s1363_s1 + $0x38] sm:$0x3] }
  0x87   :  { %v181_v26 = vpop.permute.xlu1 %180  ;;  %v129_v27 = vpop.permute.xlu0 %128  ;;  %v320_v7 = vrot.slane %v29_v56, %v1160_v47 }
  0x88   :  { %vm182_vm12 = vcmp.eq.s32.totalorder %v181_v26, 1  ;;  %vm130_vm13 = vcmp.eq.s32.totalorder %v129_v27, 1 }
  0x89   :  { %v147_v31 = vsel %vm130_vm13, %v134_v60, %v121_v24  ;;  %v148_v32 = vsel %vm130_vm13, %v138_v61, %v122_v25  ;;  %v149_v33 = vsel %vm130_vm13, %v142_v62, %v123_v29  ;;  %v150_v34 = vsel %vm130_vm13, %v146_v63, %v124_v30 }
  0x8a   :  { %v173_v35 = vsel %vm156_vm11, %v160_v0, %v147_v31  ;;  %v174_v36 = vsel %vm156_vm11, %v164_v1, %v148_v32  ;;  %v175_v37 = vsel %vm156_vm11, %v168_v3, %v149_v33  ;;  %v176_v38 = vsel %vm156_vm11, %v172_v4, %v150_v34 }
  0x8b   :  { %v233_v39 = vpop.permute.xlu1 %232  ;;  %v199_v40 = vsel %vm182_vm12, %v186_v5, %v173_v35  ;;  %v200_v41 = vsel %vm182_vm12, %v190_v9, %v174_v36  ;;  %v201_v42 = vsel %vm182_vm12, %v194_v10, %v175_v37  ;;  %v202_v43 = vsel %vm182_vm12, %v198_v11, %v176_v38  ;;  %v207_v45 = vpop.permute.xlu0 %206 }
  0x8c   :  { %vm234_vm14 = vcmp.eq.s32.totalorder %v233_v39, 1  ;;  %vm208_vm15 = vcmp.eq.s32.totalorder %v207_v45, 1  ;;  %v290_v60 = vrot.slane %v1165_v48, %v1255_v23  ;;  %v294_v61 = vrot.slane %v1170_v49, %v1255_v23 }
  0x8d   :  { %v225_v62 = vsel %vm208_vm15, %v212_v12, %v199_v40  ;;  %v226_v63 = vsel %vm208_vm15, %v216_v13, %v200_v41  ;;  %v227_v0 = vsel %vm208_vm15, %v220_v14, %v201_v42  ;;  %v228_v1 = vsel %vm208_vm15, %v224_v15, %v202_v43 }
  0x8e   :  { %v298_v3 = vrot.slane %v1175_v50, %v1255_v23  ;;  %v302_v4 = vrot.slane %v1183_v52, %v1255_v23  ;;  %v316_v5 = vrot.slane %v28_v55, %v1160_v47  ;;  %v251_v48 = vsel %vm234_vm14, %v238_v16, %v225_v62 }
  0x8f   :  { %v285_v8 = vpop.permute.xlu1 %284  ;;  %v252_v9 = vsel %vm234_vm14, %v242_v17, %v226_v63  ;;  %v259_v49 = vpop.permute.xlu0 %258  ;;  %v324_v10 = vrot.slane %v30_v57, %v1160_v47  ;;  %v328_v11 = vrot.slane %v31_v59, %v1160_v47  ;;  %v253_v50 = vsel %vm234_vm14, %v246_v18, %v227_v0 }
  0x90   :  { %vm286_vm0 = vcmp.eq.s32.totalorder %v285_v8, 1  ;;  %v254_v12 = vsel %vm234_vm14, %v250_v19, %v228_v1  ;;  %vm260_vm1 = vcmp.eq.s32.totalorder %v259_v49, 1  ;;  %v342_v24 = vrot.slane %v28_v55, %v1178_v51 }
  0x91   :  { %v277_v52 = vsel %vm260_vm1, %v264_v20, %v251_v48  ;;  %v278_v13 = vsel %vm260_vm1, %v268_v21, %v252_v9  ;;  %v279_v14 = vsel %vm260_vm1, %v272_v22, %v253_v50  ;;  %v280_v15 = vsel %vm260_vm1, %v276_v28, %v254_v12 }
  0x92   :  { %v350_v16 = vrot.slane %v30_v57, %v1178_v51  ;;  %v354_v17 = vrot.slane %v31_v59, %v1178_v51  ;;  %v346_v25 = vrot.slane %v29_v56, %v1178_v51  ;;  %v303_v27 = vsel %vm286_vm0, %v290_v60, %v277_v52 }
  0x93   :  { %v337_v26 = vpop.permute.xlu1 %336  ;;  %v304_v18 = vsel %vm286_vm0, %v294_v61, %v278_v13  ;;  %v311_v29 = vpop.permute.xlu0 %310  ;;  %v305_v19 = vsel %vm286_vm0, %v298_v3, %v279_v14  ;;  %v306_v20 = vsel %vm286_vm0, %v302_v4, %v280_v15 }
  0x94   :  { %vm338_vm2 = vcmp.eq.s32.totalorder %v337_v26, 1  ;;  %vm312_vm3 = vcmp.eq.s32.totalorder %v311_v29, 1 }
  0x95   :  { %v329_v21 = vsel %vm312_vm3, %v316_v5, %v303_v27  ;;  %v330_v22 = vsel %vm312_vm3, %v320_v7, %v304_v18  ;;  %v331_v28 = vsel %vm312_vm3, %v324_v10, %v305_v19  ;;  %v332_v30 = vsel %vm312_vm3, %v328_v11, %v306_v20 }
  0x96   :  { %v1303_v31 = vsel %vm338_vm2, %v342_v24, %v329_v21  ;;  %v1305_v32 = vsel %vm338_vm2, %v350_v16, %v331_v28  ;;  %v1307_v33 = vsel %vm338_vm2, %v354_v17, %v332_v30  ;;  %v1309_v34 = vsel %vm338_vm2, %v346_v25, %v330_v22 }
  0x97   :  { %v359_v35 = vrot.slane %v1303_v31, 4  ;;  %v371_v36 = vrot.slane %v1305_v32, 4  ;;  %v377_v37 = vrot.slane %v1307_v33, 4  ;;  %v387_v38 = vmul.f32 %v1303_v31, %v1303_v31 }
  0x98   :  { %v389_v39 = vmul.f32 %v1305_v32, %v1305_v32  ;;  %v390_v40 = vmul.f32 %v1307_v33, %v1307_v33  ;;  %v365_v41 = vrot.slane %v1309_v34, 4  ;;  %v388_v42 = vmul.f32 %v1309_v34, %v1309_v34 }
  0x99   :  { %v360_v43 = vadd.f32 %v359_v35, %v1303_v31  ;;  %v372_v45 = vadd.f32 %v371_v36, %v1305_v32  ;;  %v378_v55 = vadd.f32 %v377_v37, %v1307_v33  ;;  %v391_v56 = vrot.slane %v387_v38, 4 }
  0x9a   :  { %v403_v57 = vrot.slane %v389_v39, 4  ;;  %v409_v59 = vrot.slane %v390_v40, 4  ;;  %v366_v60 = vadd.f32 %v365_v41, %v1309_v34  ;;  %v397_v61 = vrot.slane %v388_v42, 4 }
  0x9b   :  { %v361_v62 = vrot.slane %v360_v43, 2  ;;  %v373_v63 = vrot.slane %v372_v45, 2  ;;  %v379_v0 = vrot.slane %v378_v55, 2  ;;  %v392_v1 = vadd.f32 %v391_v56, %v387_v38 }
  0x9c   :  { %v404_v3 = vadd.f32 %v403_v57, %v389_v39  ;;  %v410_v4 = vadd.f32 %v409_v59, %v390_v40  ;;  %v367_v5 = vrot.slane %v366_v60, 2  ;;  %v398_v7 = vadd.f32 %v397_v61, %v388_v42 }
  0x9d   :  { %v362_v8 = vadd.f32 %v361_v62, %v360_v43  ;;  %v374_v48 = vadd.f32 %v373_v63, %v372_v45  ;;  %v380_v9 = vadd.f32 %v379_v0, %v378_v55  ;;  %v393_v49 = vrot.slane %v392_v1, 2 }
  0x9e   :  { %v405_v10 = vrot.slane %v404_v3, 2  ;;  %v411_v11 = vrot.slane %v410_v4, 2  ;;  %v368_v50 = vadd.f32 %v367_v5, %v366_v60  ;;  %v399_v12 = vrot.slane %v398_v7, 2 }
  0x9f   :  { %v363_v52 = vrot.slane %v362_v8, 1  ;;  %v375_v13 = vrot.slane %v374_v48, 1  ;;  %v381_v14 = vrot.slane %v380_v9, 1  ;;  %v394_v15 = vadd.f32 %v393_v49, %v392_v1 }
  0xa0   :  { %v406_v24 = vadd.f32 %v405_v10, %v404_v3  ;;  %v412_v16 = vadd.f32 %v411_v11, %v410_v4  ;;  %v369_v17 = vrot.slane %v368_v50, 1  ;;  %v400_v25 = vadd.f32 %v399_v12, %v398_v7 }
  0xa1   :  { %v364_v26 = vadd.f32 %v363_v52, %v362_v8  ;;  %v376_v27 = vadd.f32 %v375_v13, %v374_v48  ;;  %v382_v18 = vadd.f32 %v381_v14, %v380_v9  ;;  %v395_v29 = vrot.slane %v394_v15, 1 }
  0xa2   :  { %v407_v19 = vrot.slane %v406_v24, 1  ;;  %v413_v20 = vrot.slane %v412_v16, 1  ;;  %v370_v21 = vadd.f32 %v369_v17, %v368_v50  ;;  %v401_v22 = vrot.slane %v400_v25, 1  ;;  %v32_v17 = vld [vmem:[%s1364_s2] sm:$0xff] }
  0xa3   :  { %v385_v28 = vmul.f32 0.125, %v376_v27  ;;  %v386_v30 = vmul.f32 0.125, %v382_v18  ;;  %v396_v35 = vadd.f32 %v395_v29, %v394_v15  ;;  %v383_v36 = vmul.f32 0.125, %v364_v26 }
  0xa4   :  { %v408_v37 = vadd.f32 %v407_v19, %v406_v24  ;;  %v414_v38 = vadd.f32 %v413_v20, %v412_v16  ;;  %v384_v39 = vmul.f32 0.125, %v370_v21  ;;  %v402_v40 = vadd.f32 %v401_v22, %v400_v25 }
  0xa5   :  { %v415_v41 = vmul.f32 0.125, %v396_v35  ;;  %v421_v42 = vmul.f32 %v385_v28, %v385_v28  ;;  %v422_v43 = vmul.f32 %v386_v30, %v386_v30  ;;  %v419_v45 = vmul.f32 %v383_v36, %v383_v36 }
  0xa6   :  { %v417_v55 = vmul.f32 0.125, %v408_v37  ;;  %v418_v56 = vmul.f32 0.125, %v414_v38  ;;  %v416_v57 = vmul.f32 0.125, %v402_v40  ;;  %v420_v59 = vmul.f32 %v384_v39, %v384_v39 }
  0xa7   :  { %v423_v60 = vsub.f32 %v415_v41, %v419_v45  ;;  %v918_v9 = vmov 1983009808  }
  0xa8   :  { %v425_v61 = vsub.f32 %v417_v55, %v421_v42  ;;  %v426_v62 = vsub.f32 %v418_v56, %v422_v43  ;;  %v424_v63 = vsub.f32 %v416_v57, %v420_v59  ;;  %v446_v49 = vunpack.c.l.s4 %v918_v9 }
  0xa9   :  { %v427_v0 = vmax.f32 %v423_v60, 0.0 }
  0xaa   :  { %v429_v1 = vmax.f32 %v425_v61, 0.0  ;;  %v430_v3 = vmax.f32 %v426_v62, 0.0  ;;  %v428_v4 = vmax.f32 %v424_v63, 0.0  ;;  %v447_v10 = vunpack.c.0.s8 %v446_v49 }
  0xab   :  { %v431_v5 = vadd.f32 1e-05, %v427_v0 }
  0xac   :  { %v433_v7 = vadd.f32 1e-05, %v429_v1  ;;  %v434_v8 = vadd.f32 1e-05, %v430_v3  ;;  %v432_v48 = vadd.f32 1e-05, %v428_v4  ;;  %v450_v12 = vsub.s32 %v447_v10, %v1157_v46 }
  0xad   :  { %904 = vrsqrt.f32 %v431_v5  ;;  %v763_v3 = vld [vmem:[%s1365_s4] ss:$0 sm:$0xff] }
  0xae   :  { %906 = vrsqrt.f32 %v433_v7 }
  0xaf   :  { %908 = vrsqrt.f32 %v434_v8 }
  0xb0   :  { %910 = vrsqrt.f32 %v432_v48 }
  0xb7   :  { %v905_v11 = vpop.eup %904 }
  0xb8   :  { %v907_v50 = vpop.eup %906 }
  0xb9   :  { %v909_v52 = vpop.eup %908 }
  0xba   :  { %v911_v13 = vpop.eup %910  ;;  %v444_v14 = vcombine.low %v907_v50, %v909_v52 }
  0xbb   :  { %v443_v15 = vcombine.low %v905_v11, %v911_v13 }
  0xbc   :  { %v458_v24 = vrot.slane %v444_v14, %v450_v12  ;;  %v733_v14 = vpop.permute.xlu0 %732 }
  0xbd   :  { %v451_v16 = vrot.slane %v443_v15, %v450_v12 }
  0xbf   :  { %v459_v25 = vcombine.low %v451_v16, %v458_v24 }
  0xc1   :  { %v461_v26 = vmul.f32 %v459_v25, %v32_v17 }
  0xc3   :  { %v466_v27 = vrot.slane %v461_v26, %v1160_v47  ;;  %v470_v18 = vrot.slane %v461_v26, %v1186_v53  ;;  %v474_v29 = vrot.slane %v461_v26, %v1198_v58  ;;  %v478_v46 = vrot.slane %v461_v26, %v1224_v6 }
  0xc5   :  { %v483_v19 = vmul.f32 %v466_v27, %v383_v36  ;;  %v484_v20 = vmul.f32 %v470_v18, %v384_v39  ;;  %v485_v21 = vmul.f32 %v474_v29, %v385_v28  ;;  %v486_v22 = vmul.f32 %v478_v46, %v386_v30 }
  0xc6   :  { %v518_v43 = vrot.slane %v470_v18, %v1160_v47  ;;  %v526_v45 = vrot.slane %v478_v46, %v1160_v47  ;;  %v514_v53 = vrot.slane %v466_v27, %v1160_v47  ;;  %v522_v58 = vrot.slane %v474_v29, %v1160_v47 }
  0xc7   :  { %v491_v35 = vcombine.low %v483_v19, %v484_v20  ;;  %v492_v37 = vcombine.low %v485_v21, %v486_v22 }
  0xc8   :  { %v528_v39 = vmul.f32 %v518_v43, %v1309_v34  ;;  %v530_v56 = vmul.f32 %v526_v45, %v1307_v33  ;;  %v527_v57 = vmul.f32 %v514_v53, %v1303_v31  ;;  %v529_v59 = vmul.f32 %v522_v58, %v1305_v32 }
  0xc9   :  { %v499_v38 = vrot.slane %v491_v35, %v450_v12  ;;  %v506_v40 = vrot.slane %v492_v37, %v450_v12 }
  0xcb   :  { %v507_v41 = vcombine.low %v499_v38, %v506_v40 }
  0xcd   :  { %v508_v42 = vrot.slane %v507_v41, 7 }
  0xcf   :  { %v510_v55 = vsub.f32 %v32_v17, %v508_v42 }
  0xd1   :  { %v539_v6 = vrot.slane %v510_v55, %v1189_v54  ;;  %v547_v28 = vrot.slane %v510_v55, %v1255_v23  ;;  %v535_v30 = vrot.slane %v510_v55, %v1178_v51  ;;  %v543_v36 = vrot.slane %v510_v55, %v1215_v2 }
  0xd3   :  { %v559_v60 = vrot.slane %v539_v6, %v1178_v51  ;;  %v567_v47 = vrot.slane %v547_v28, %v1178_v51  ;;  %v555_v54 = vrot.slane %v535_v30, %v1178_v51  ;;  %v563_v23 = vrot.slane %v543_v36, %v1178_v51 }
  0xd5   :  { %v569_v61 = vadd.f32 %v559_v60, %v528_v39  ;;  %v571_v62 = vadd.f32 %v567_v47, %v530_v56  ;;  %v568_v63 = vadd.f32 %v555_v54, %v527_v57  ;;  %v570_v2 = vadd.f32 %v563_v23, %v529_v59 }
  0xd7   :  { %v573_v0 = vmax.f32 %v569_v61, 0.0  ;;  %v575_v34 = vmax.f32 %v571_v62, 0.0  ;;  %v572_v1 = vmax.f32 %v568_v63, 0.0  ;;  %v574_v33 = vmax.f32 %v570_v2, 0.0 }
  0xd9   :  { %646 = vmatprep.mubr.f32.mxu0 %v573_v0  ;;  %716 = vmatprep.mubr.f32.mxu1 %v575_v34 }
  0xda   :  { %647 = vmatmul.mubr.f32.vlgmr.msra.gmra.mrb[0].mxu0 %v572_v1  ;;  %717 = vmatmul.mubr.f32.vlgmr.msra.gmra.mrb[0].mxu1 %v574_v33 }
 0x1ad   :  { %v796_v31 = vpop.f32.mrb[0].mxu0  ;;  %v831_v32 = vpop.f32.mrb[0].mxu1 }
 0x1ae   :  { %v797_v4 = vpop.f32.mrb[1].mxu0  ;;  %v832_v51 = vpop.f32.mrb[1].mxu1 }
 0x1af   :  { %v798_v5 = vadd.f32 %v797_v4, %v796_v31  ;;  %v833_v7 = vadd.f32 %v832_v51, %v831_v32 }
 0x1b1   :  { %v649_v8 = vadd.f32 %v798_v5, %v763_v3 }
 0x1b3   :  { %v719_v48 = vadd.f32 %v833_v7, %v649_v8 }
 0x1b5   :  { %v723_v9 = vand.u32 2147483647, %v719_v48  ;;  %742 = vrot.lane.b32.xlu0 %v719_v48, %s917_s27  ;;  %v722_v52 = vmax.f32 %v719_v48, 0.0 }
 0x1b7   :  { %v724_v49 = vsub.f32 0.0, %v723_v9 }
 0x1b9   :  { %v725_v10 = vmul.f32 1.442695, %v724_v49  ;;  %749 = vrot.lane.b32.xlu0 %v1153_v44, %s919_s20 }
 0x1bb   :  { %912 = vpow2.f32 %v725_v10 }
 0x1c5   :  { %v913_v11 = vpop.eup %912 }
 0x1c6   :  { %v727_v50 = vadd.f32 1.0, %v913_v11 }
 0x1c8   :  { %914 = vlog2.f32 %v727_v50 }
 0x1d2   :  { %v915_v12 = vpop.eup %914 }
 0x1d3   :  { %v729_v13 = vmul.f32 0.6931472, %v915_v12 }
 0x1d5   :  { %v730_v15 = vadd.f32 %v729_v13, %v722_v52 }
 0x1d7   :  { %v735_v24 = vmul.f32 %v733_v14, %v730_v15 }
 0x1d9   :  { %737 = vrot.lane.b32.xlu1 %v735_v24, %s919_s20 }
 0x1dd   :  { %746 = vrot.lane.b32.xlu1 %v730_v15, %s917_s27 }
 0x227   :  { %v743_v16 = vpop.permute.xlu0 %742 }
 0x22b   :  { %v750_v44 = vpop.permute.xlu0 %749 }
 0x24b   :  { %v738_v17 = vpop.permute.xlu1 %737 }
 0x24c   :  { %v740_v25 = vadd.f32 %v738_v17, %v719_v48 }
 0x24e   :  { %v753_v26 = vsel %vm752_vm4, %v740_v25, %v743_v16 }
 0x24f   :  { %v747_v27 = vpop.permute.xlu1 %746 }
 0x250   :  { %v755_v18 = vsel %vm754_vm5, %v753_v26, %v747_v27 }
 0x251   :  { %v757_v29 = vsel %vm756_vm6, %v755_v18, %v750_v44 }
 0x252   :  { %758 = vst [vmem:[%s1366_s6] sm:$0xff] %v757_v29 }

</bundles_post_ra>
